<compile_context>
chip_gen: v5e
topology: v5e:2x2
jax: 0.10.0
libtpu: 0.0.40
codegen_flags: <defaults>
</compile_context>

<pallas_src>
import numpy as np
import jax
import jax.numpy as jnp
from jax import lax
from jax.experimental import pallas as pl
from jax.experimental.pallas import tpu as pltpu

_VMEM = pl.BlockSpec(memory_space=pltpu.MemorySpace.VMEM)
_BN_EPS = 1e-5
_STRIDE = 2  # ConvTranspose1d stride hard-coded in the PyTorch module


# ----------------------------------------------------------------------------
# Single fused kernel: Linear -> view -> (ConvT+ReLU+BN) x2 -> ConvT ->
#                      sigmoid -> per-(sample,channel) normalization.
# ----------------------------------------------------------------------------
def _make_decode_kernel(dx, bn_count1, bn_count2):
    dx = float(dx)
    cnt1 = float(bn_count1)   # N * L1  (elements per channel for BN stats)
    cnt2 = float(bn_count2)   # N * L2

    def conv_t(x, cm_ref, t_ref, b_ref):
        # Stride-2 ConvTranspose1d in (N*C, L) layout:
        #   out = sum_k (CM_k @ x) @ T_k + b
        # CM_k: per-sample block-diagonal channel mixer for tap k (rows).
        # T_k : 0/1 spatial scatter  l -> stride*l - padding + k   (lanes).
        y = None
        for k in range(cm_ref.shape[0]):          # static unroll, K = 4
            yk = jnp.dot(
                jnp.dot(cm_ref[k], x, preferred_element_type=jnp.float32),
                t_ref[k], preferred_element_type=jnp.float32)
            y = yk if y is None else y + yk
        return y + b_ref[...]

    def relu_bn(y, g_ref, be_ref, pp_ref, count):
        # ReLU then BatchNorm1d with training-mode (biased) batch statistics.
        # Per-channel stats over (N, L): pool same-channel rows via PP matmul,
        # then reduce over lanes.
        y = jnp.maximum(y, 0.0)
        pooled = jnp.dot(pp_ref[...], y, preferred_element_type=jnp.float32)
        mean = jnp.sum(pooled, axis=1, keepdims=True) / count
        d = y - mean
        pooled_sq = jnp.dot(pp_ref[...], d * d,
                            preferred_element_type=jnp.float32)
        var = jnp.sum(pooled_sq, axis=1, keepdims=True) / count
        return d * lax.rsqrt(var + _BN_EPS) * g_ref[...] + be_ref[...]

    def kernel(z_ref, lw_ref, lb_ref, rrep_ref, maskc_ref, coll_ref,
               cm1_ref, t1_ref, b1_ref, g1_ref, be1_ref, pp1_ref,
               cm2_ref, t2_ref, b2_ref, g2_ref, be2_ref, pp2_ref,
               cm3_ref, t3_ref, b3_ref, o_ref):
        # recon Linear, then PyTorch `.view(N, C, L0)` folded into constant
        # matmuls: (N, C*L0)  ->  rows (n, c), lanes l.
        zl = jnp.dot(z_ref[...], lw_ref[...],
                     preferred_element_type=jnp.float32) + lb_ref[...]
        rep = jnp.dot(rrep_ref[...], zl, preferred_element_type=jnp.float32)
        x = jnp.dot(rep * maskc_ref[...], coll_ref[...],
                    preferred_element_type=jnp.float32)

        x = relu_bn(conv_t(x, cm1_ref, t1_ref, b1_ref),
                    g1_ref, be1_ref, pp1_ref, cnt1)
        x = relu_bn(conv_t(x, cm2_ref, t2_ref, b2_ref),
                    g2_ref, be2_ref, pp2_ref, cnt2)
        x = conv_t(x, cm3_ref, t3_ref, b3_ref)

        s = 1.0 / (1.0 + jnp.exp(-x))                    # sigmoid
        norm = jnp.sum(s, axis=1, keepdims=True) * dx    # per (n, c)
        o_ref[...] = s / norm

    return kernel


# ----------------------------------------------------------------------------
# Host-side, one-time precomputation of all constant kernel operands
# ----------------------------------------------------------------------------
def _build_kernel_consts(params, N, hidden, L0, pad):
    H = hidden

    # de-flatten (N, H*L0) [flat index = c*L0 + l] -> rows (n, c), lanes l
    rrep = np.zeros((N * H, N), np.float32)
    maskc = np.zeros((N * H, H * L0), np.float32)
    for n in range(N):
        rrep[n * H:(n + 1) * H, n] = 1.0
        for c in range(H):
            maskc[n * H + c, c * L0:(c + 1) * L0] = 1.0
    coll = np.zeros((H * L0, L0), np.float32)
    for c in range(H):
        coll[c * L0:(c + 1) * L0, :] = np.eye(L0, dtype=np.float32)

    def conv_consts(w, b, l_in):
        w = np.asarray(w, np.float32)
        b = np.asarray(b, np.float32)
        cin, cout, K = w.shape
        l_out = (l_in - 1) * _STRIDE - 2 * pad + K
        cm = np.zeros((K, N * cout, N * cin), np.float32)
        t = np.zeros((K, l_in, l_out), np.float32)
        for k in range(K):
            for n in range(N):
                cm[k, n * cout:(n + 1) * cout,
                   n * cin:(n + 1) * cin] = w[:, :, k].T
            for l in range(l_in):
                p = _STRIDE * l - pad + k
                if 0 <= p < l_out:
                    t[k, l, p] = 1.0
        b_col = np.tile(b.reshape(cout, 1), (N, 1))
        return cm, t, b_col, l_out

    def col(v, cout):
        return np.tile(np.asarray(v, np.float32).reshape(cout, 1), (N, 1))

    def pool_mat(cout):
        pp = np.zeros((N * cout, N * cout), np.float32)
        for c in range(cout):
            for n1 in range(N):
                for n2 in range(N):
                    pp[n1 * cout + c, n2 * cout + c] = 1.0
        return pp

    w1, b1, g1, be1 = params["conv1"]
    w2, b2, g2, be2 = params["conv2"]
    w3, b3 = params["conv3"]

    cm1, t1, b1c, L1 = conv_consts(w1, b1, L0)
    cm2, t2, b2c, L2 = conv_consts(w2, b2, L1)
    cm3, t3, b3c, L3 = conv_consts(w3, b3, L2)

    consts = [
        params["lin_w"], params["lin_b"], rrep, maskc, coll,
        cm1, t1, b1c, col(g1, H), col(be1, H), pool_mat(H),
        cm2, t2, b2c, col(g2, H), col(be2, H), pool_mat(H),
        cm3, t3, b3c,
    ]
    consts = [jnp.asarray(c, jnp.float32) for c in consts]
    return consts, (L1, L2, L3)


def decode_norm_forward(z, consts, kernel, N, out_ch, L3):
    out = pl.pallas_call(
        kernel,
        out_shape=jax.ShapeDtypeStruct((N * out_ch, L3), jnp.float32),
        in_specs=[_VMEM] * (1 + len(consts)),
        out_specs=_VMEM,
    )(z, *consts)
    # (N*C, L) -> (N, C, L): pure row-major reshape, no transpose needed.
    return out.reshape(N, out_ch, L3)


# ----------------------------------------------------------------------------
# Parameter init (deterministic, synthetic)
# ----------------------------------------------------------------------------
def init_params(key, latent, hidden, out_ch, L0, K):
    ks = jax.random.split(key, 8)

    def u(k, shape, fan_in):
        s = 1.0 / np.sqrt(fan_in)
        return jax.random.uniform(k, shape, jnp.float32, -s, s)

    return {
        "lin_w": u(ks[0], (latent, hidden * L0), latent),
        "lin_b": u(ks[1], (1, hidden * L0), latent),
        "conv1": (u(ks[2], (hidden, hidden, K), hidden * K),
                  u(ks[3], (hidden,), hidden * K),
                  jnp.ones((hidden,), jnp.float32),     # BN weight default
                  jnp.zeros((hidden,), jnp.float32)),   # BN bias default
        "conv2": (u(ks[4], (hidden, hidden, K), hidden * K),
                  u(ks[5], (hidden,), hidden * K),
                  jnp.ones((hidden,), jnp.float32),
                  jnp.zeros((hidden,), jnp.float32)),
        "conv3": (u(ks[6], (hidden, out_ch, K), hidden * K),
                  u(ks[7], (out_ch,), hidden * K)),
    }


# ----------------------------------------------------------------------------
# Pure-JAX reference (mirrors PyTorch directly) for a numeric sanity check
# ----------------------------------------------------------------------------
def _ref_conv_transpose1d(x, w, b, pad):
    # x: (N, Cin, Lin), w: (Cin, Cout, K) -- PyTorch ConvTranspose1d, stride 2.
    n, _, l_in = x.shape
    _, cout, K = w.shape
    l_out = (l_in - 1) * _STRIDE - 2 * pad + K
    cols = []
    for p in range(l_out):
        acc = jnp.zeros((n, cout), jnp.float32)
        for k in range(K):
            num = p + pad - k
            if num % _STRIDE == 0 and 0 <= num // _STRIDE < l_in:
                acc = acc + x[:, :, num // _STRIDE] @ w[:, :, k]
        cols.append(acc + b)
    return jnp.stack(cols, axis=2)


def _ref_bn(x, gamma, beta):
    m = x.mean(axis=(0, 2), keepdims=True)
    v = ((x - m) ** 2).mean(axis=(0, 2), keepdims=True)
    return ((x - m) * lax.rsqrt(v + _BN_EPS)
            * gamma[None, :, None] + beta[None, :, None])


def _ref_forward(z, params, N, hidden, L0, pad, dx):
    x = z @ params["lin_w"] + params["lin_b"]
    x = x.reshape(N, hidden, L0)
    w1, b1, g1, be1 = params["conv1"]
    x = _ref_bn(jnp.maximum(_ref_conv_transpose1d(x, w1, b1, pad), 0.0), g1, be1)
    w2, b2, g2, be2 = params["conv2"]
    x = _ref_bn(jnp.maximum(_ref_conv_transpose1d(x, w2, b2, pad), 0.0), g2, be2)
    w3, b3 = params["conv3"]
    x = _ref_conv_transpose1d(x, w3, b3, pad)
    s = jax.nn.sigmoid(x)
    norm = jnp.sum(s, axis=2) * dx
    return s / norm[:, :, None]


if __name__ == "__main__":
    # Module hyperparameters (decoder counterpart of the 4-channel encoder).
    N = 2
    latent_dimension = 6
    hidden_channels = 8
    output_channels = 4
    output_size = 64
    kernel_size = 3            # module uses ConvTranspose kernel_size + 1 = 4
    padding = 1
    pooling_size = 2
    dx = 0.1
    K = kernel_size + 1
    L0 = output_size // pooling_size ** 3      # 8

    key = jax.random.PRNGKey(0)
    k_z, k_p = jax.random.split(key)
    z = jax.random.normal(k_z, (N, latent_dimension), jnp.float32)
    params = init_params(k_p, latent_dimension, hidden_channels,
                         output_channels, L0, K)

    consts, (L1, L2, L3) = _build_kernel_consts(
        params, N, hidden_channels, L0, padding)
    assert L3 == output_size
    kernel = _make_decode_kernel(dx, N * L1, N * L2)

    fwd = jax.jit(lambda zz: decode_norm_forward(
        zz, consts, kernel, N, output_channels, L3))
    out = fwd(z)
    jax.block_until_ready(out)

    out_ref = _ref_forward(z, params, N, hidden_channels, L0, padding, dx)
    np.testing.assert_allclose(np.asarray(out), np.asarray(out_ref),
                               rtol=1e-4, atol=1e-4)
    assert out.shape == (N, output_channels, output_size)
    # sanity: normalization means sum over L times dx is exactly 1 per (n, c)
    np.testing.assert_allclose(np.asarray(out).sum(axis=2) * dx, 1.0,
                               rtol=1e-5, atol=1e-5)
    print("KERNEL_OK")
</pallas_src>

<mosaic_0001>
module attributes {stable_mosaic.version = 11 : i64} {
  func.func @kernel(%arg0: memref<2x6xf32, #tpu.memory_space<vmem>>, %arg1: memref<6x64xf32, #tpu.memory_space<vmem>>, %arg2: memref<1x64xf32, #tpu.memory_space<vmem>>, %arg3: memref<16x2xf32, #tpu.memory_space<vmem>>, %arg4: memref<16x64xf32, #tpu.memory_space<vmem>>, %arg5: memref<64x8xf32, #tpu.memory_space<vmem>>, %arg6: memref<4x16x16xf32, #tpu.memory_space<vmem>>, %arg7: memref<4x8x16xf32, #tpu.memory_space<vmem>>, %arg8: memref<16x1xf32, #tpu.memory_space<vmem>>, %arg9: memref<16x1xf32, #tpu.memory_space<vmem>>, %arg10: memref<16x1xf32, #tpu.memory_space<vmem>>, %arg11: memref<16x16xf32, #tpu.memory_space<vmem>>, %arg12: memref<4x16x16xf32, #tpu.memory_space<vmem>>, %arg13: memref<4x16x32xf32, #tpu.memory_space<vmem>>, %arg14: memref<16x1xf32, #tpu.memory_space<vmem>>, %arg15: memref<16x1xf32, #tpu.memory_space<vmem>>, %arg16: memref<16x1xf32, #tpu.memory_space<vmem>>, %arg17: memref<16x16xf32, #tpu.memory_space<vmem>>, %arg18: memref<4x8x16xf32, #tpu.memory_space<vmem>>, %arg19: memref<4x32x64xf32, #tpu.memory_space<vmem>>, %arg20: memref<8x1xf32, #tpu.memory_space<vmem>>, %arg21: memref<8x64xf32, #tpu.memory_space<vmem>>) attributes {dimension_semantics = [], scalar_prefetch = 0 : i64, scratch_operands = 0 : i64, tpu.core_type = #tpu.core_type<tc>} {
    %c0 = arith.constant 0 : index
    %c0_0 = arith.constant 0 : index
    %0 = vector.load %arg0[%c0, %c0_0] : memref<2x6xf32, #tpu.memory_space<vmem>>, vector<2x6xf32>
    %c0_1 = arith.constant 0 : index
    %c0_2 = arith.constant 0 : index
    %1 = vector.load %arg1[%c0_1, %c0_2] : memref<6x64xf32, #tpu.memory_space<vmem>>, vector<6x64xf32>
    %cst = arith.constant dense<0.000000e+00> : vector<2x64xf32>
    %2 = tpu.matmul %0, %1, %cst {dimension_numbers = #tpu.dot_dimension_numbers<[1], [0], [0], [1], [0, 0, 1, 1], [], []>} : vector<2x6xf32>, vector<6x64xf32>, vector<2x64xf32> -> vector<2x64xf32>
    %c0_3 = arith.constant 0 : index
    %c0_4 = arith.constant 0 : index
    %3 = vector.load %arg2[%c0_3, %c0_4] : memref<1x64xf32, #tpu.memory_space<vmem>>, vector<1x64xf32>
    %4 = vector.broadcast %3 : vector<1x64xf32> to vector<2x64xf32>
    %5 = arith.addf %2, %4 : vector<2x64xf32>
    %c0_5 = arith.constant 0 : index
    %c0_6 = arith.constant 0 : index
    %6 = vector.load %arg3[%c0_5, %c0_6] : memref<16x2xf32, #tpu.memory_space<vmem>>, vector<16x2xf32>
    %cst_7 = arith.constant dense<0.000000e+00> : vector<16x64xf32>
    %7 = tpu.matmul %6, %5, %cst_7 {dimension_numbers = #tpu.dot_dimension_numbers<[1], [0], [0], [1], [0, 0, 1, 1], [], []>} : vector<16x2xf32>, vector<2x64xf32>, vector<16x64xf32> -> vector<16x64xf32>
    %c0_8 = arith.constant 0 : index
    %c0_9 = arith.constant 0 : index
    %8 = vector.load %arg4[%c0_8, %c0_9] : memref<16x64xf32, #tpu.memory_space<vmem>>, vector<16x64xf32>
    %9 = arith.mulf %7, %8 : vector<16x64xf32>
    %c0_10 = arith.constant 0 : index
    %c0_11 = arith.constant 0 : index
    %10 = vector.load %arg5[%c0_10, %c0_11] : memref<64x8xf32, #tpu.memory_space<vmem>>, vector<64x8xf32>
    %cst_12 = arith.constant dense<0.000000e+00> : vector<16x8xf32>
    %11 = tpu.matmul %9, %10, %cst_12 {dimension_numbers = #tpu.dot_dimension_numbers<[1], [0], [0], [1], [0, 0, 1, 1], [], []>} : vector<16x64xf32>, vector<64x8xf32>, vector<16x8xf32> -> vector<16x8xf32>
    %c0_13 = arith.constant 0 : index
    %c0_14 = arith.constant 0 : index
    %c0_15 = arith.constant 0 : index
    %12 = vector.load %arg6[%c0_13, %c0_14, %c0_15] : memref<4x16x16xf32, #tpu.memory_space<vmem>>, vector<1x16x16xf32>
    %13 = vector.shape_cast %12 : vector<1x16x16xf32> to vector<16x16xf32>
    %cst_16 = arith.constant dense<0.000000e+00> : vector<16x8xf32>
    %14 = tpu.matmul %13, %11, %cst_16 {dimension_numbers = #tpu.dot_dimension_numbers<[1], [0], [0], [1], [0, 0, 1, 1], [], []>} : vector<16x16xf32>, vector<16x8xf32>, vector<16x8xf32> -> vector<16x8xf32>
    %c0_17 = arith.constant 0 : index
    %c0_18 = arith.constant 0 : index
    %c0_19 = arith.constant 0 : index
    %15 = vector.load %arg7[%c0_17, %c0_18, %c0_19] : memref<4x8x16xf32, #tpu.memory_space<vmem>>, vector<1x8x16xf32>
    %16 = vector.shape_cast %15 : vector<1x8x16xf32> to vector<8x16xf32>
    %cst_20 = arith.constant dense<0.000000e+00> : vector<16x16xf32>
    %17 = tpu.matmul %14, %16, %cst_20 {dimension_numbers = #tpu.dot_dimension_numbers<[1], [0], [0], [1], [0, 0, 1, 1], [], []>} : vector<16x8xf32>, vector<8x16xf32>, vector<16x16xf32> -> vector<16x16xf32>
    %c1 = arith.constant 1 : index
    %c0_21 = arith.constant 0 : index
    %c0_22 = arith.constant 0 : index
    %18 = vector.load %arg6[%c1, %c0_21, %c0_22] : memref<4x16x16xf32, #tpu.memory_space<vmem>>, vector<1x16x16xf32>
    %19 = vector.shape_cast %18 : vector<1x16x16xf32> to vector<16x16xf32>
    %cst_23 = arith.constant dense<0.000000e+00> : vector<16x8xf32>
    %20 = tpu.matmul %19, %11, %cst_23 {dimension_numbers = #tpu.dot_dimension_numbers<[1], [0], [0], [1], [0, 0, 1, 1], [], []>} : vector<16x16xf32>, vector<16x8xf32>, vector<16x8xf32> -> vector<16x8xf32>
    %c1_24 = arith.constant 1 : index
    %c0_25 = arith.constant 0 : index
    %c0_26 = arith.constant 0 : index
    %21 = vector.load %arg7[%c1_24, %c0_25, %c0_26] : memref<4x8x16xf32, #tpu.memory_space<vmem>>, vector<1x8x16xf32>
    %22 = vector.shape_cast %21 : vector<1x8x16xf32> to vector<8x16xf32>
    %cst_27 = arith.constant dense<0.000000e+00> : vector<16x16xf32>
    %23 = tpu.matmul %20, %22, %cst_27 {dimension_numbers = #tpu.dot_dimension_numbers<[1], [0], [0], [1], [0, 0, 1, 1], [], []>} : vector<16x8xf32>, vector<8x16xf32>, vector<16x16xf32> -> vector<16x16xf32>
    %24 = arith.addf %17, %23 : vector<16x16xf32>
    %c2 = arith.constant 2 : index
    %c0_28 = arith.constant 0 : index
    %c0_29 = arith.constant 0 : index
    %25 = vector.load %arg6[%c2, %c0_28, %c0_29] : memref<4x16x16xf32, #tpu.memory_space<vmem>>, vector<1x16x16xf32>
    %26 = vector.shape_cast %25 : vector<1x16x16xf32> to vector<16x16xf32>
    %cst_30 = arith.constant dense<0.000000e+00> : vector<16x8xf32>
    %27 = tpu.matmul %26, %11, %cst_30 {dimension_numbers = #tpu.dot_dimension_numbers<[1], [0], [0], [1], [0, 0, 1, 1], [], []>} : vector<16x16xf32>, vector<16x8xf32>, vector<16x8xf32> -> vector<16x8xf32>
    %c2_31 = arith.constant 2 : index
    %c0_32 = arith.constant 0 : index
    %c0_33 = arith.constant 0 : index
    %28 = vector.load %arg7[%c2_31, %c0_32, %c0_33] : memref<4x8x16xf32, #tpu.memory_space<vmem>>, vector<1x8x16xf32>
    %29 = vector.shape_cast %28 : vector<1x8x16xf32> to vector<8x16xf32>
    %cst_34 = arith.constant dense<0.000000e+00> : vector<16x16xf32>
    %30 = tpu.matmul %27, %29, %cst_34 {dimension_numbers = #tpu.dot_dimension_numbers<[1], [0], [0], [1], [0, 0, 1, 1], [], []>} : vector<16x8xf32>, vector<8x16xf32>, vector<16x16xf32> -> vector<16x16xf32>
    %31 = arith.addf %24, %30 : vector<16x16xf32>
    %c3 = arith.constant 3 : index
    %c0_35 = arith.constant 0 : index
    %c0_36 = arith.constant 0 : index
    %32 = vector.load %arg6[%c3, %c0_35, %c0_36] : memref<4x16x16xf32, #tpu.memory_space<vmem>>, vector<1x16x16xf32>
    %33 = vector.shape_cast %32 : vector<1x16x16xf32> to vector<16x16xf32>
    %cst_37 = arith.constant dense<0.000000e+00> : vector<16x8xf32>
    %34 = tpu.matmul %33, %11, %cst_37 {dimension_numbers = #tpu.dot_dimension_numbers<[1], [0], [0], [1], [0, 0, 1, 1], [], []>} : vector<16x16xf32>, vector<16x8xf32>, vector<16x8xf32> -> vector<16x8xf32>
    %c3_38 = arith.constant 3 : index
    %c0_39 = arith.constant 0 : index
    %c0_40 = arith.constant 0 : index
    %35 = vector.load %arg7[%c3_38, %c0_39, %c0_40] : memref<4x8x16xf32, #tpu.memory_space<vmem>>, vector<1x8x16xf32>
    %36 = vector.shape_cast %35 : vector<1x8x16xf32> to vector<8x16xf32>
    %cst_41 = arith.constant dense<0.000000e+00> : vector<16x16xf32>
    %37 = tpu.matmul %34, %36, %cst_41 {dimension_numbers = #tpu.dot_dimension_numbers<[1], [0], [0], [1], [0, 0, 1, 1], [], []>} : vector<16x8xf32>, vector<8x16xf32>, vector<16x16xf32> -> vector<16x16xf32>
    %38 = arith.addf %31, %37 : vector<16x16xf32>
    %c0_42 = arith.constant 0 : index
    %c0_43 = arith.constant 0 : index
    %39 = vector.load %arg8[%c0_42, %c0_43] : memref<16x1xf32, #tpu.memory_space<vmem>>, vector<16x1xf32>
    %40 = vector.broadcast %39 : vector<16x1xf32> to vector<16x16xf32>
    %41 = arith.addf %38, %40 : vector<16x16xf32>
    %cst_44 = arith.constant 0.000000e+00 : f32
    %42 = vector.broadcast %cst_44 : f32 to vector<16x16xf32>
    %43 = arith.maximumf %41, %42 : vector<16x16xf32>
    %c0_45 = arith.constant 0 : index
    %c0_46 = arith.constant 0 : index
    %44 = vector.load %arg11[%c0_45, %c0_46] : memref<16x16xf32, #tpu.memory_space<vmem>>, vector<16x16xf32>
    %cst_47 = arith.constant dense<0.000000e+00> : vector<16x16xf32>
    %45 = tpu.matmul %44, %43, %cst_47 {dimension_numbers = #tpu.dot_dimension_numbers<[1], [0], [0], [1], [0, 0, 1, 1], [], []>} : vector<16x16xf32>, vector<16x16xf32>, vector<16x16xf32> -> vector<16x16xf32>
    %cst_48 = arith.constant dense<0.000000e+00> : vector<16xf32>
    %46 = vector.multi_reduction <add>, %45, %cst_48 [1] : vector<16x16xf32> to vector<16xf32>
    %47 = vector.shape_cast %46 : vector<16xf32> to vector<16x1xf32>
    %cst_49 = arith.constant 3.200000e+01 : f32
    %48 = vector.broadcast %cst_49 : f32 to vector<16x1xf32>
    %49 = arith.divf %47, %48 : vector<16x1xf32>
    %50 = vector.broadcast %49 : vector<16x1xf32> to vector<16x16xf32>
    %51 = arith.subf %43, %50 : vector<16x16xf32>
    %c0_50 = arith.constant 0 : index
    %c0_51 = arith.constant 0 : index
    %52 = vector.load %arg11[%c0_50, %c0_51] : memref<16x16xf32, #tpu.memory_space<vmem>>, vector<16x16xf32>
    %53 = arith.mulf %51, %51 : vector<16x16xf32>
    %cst_52 = arith.constant dense<0.000000e+00> : vector<16x16xf32>
    %54 = tpu.matmul %52, %53, %cst_52 {dimension_numbers = #tpu.dot_dimension_numbers<[1], [0], [0], [1], [0, 0, 1, 1], [], []>} : vector<16x16xf32>, vector<16x16xf32>, vector<16x16xf32> -> vector<16x16xf32>
    %cst_53 = arith.constant dense<0.000000e+00> : vector<16xf32>
    %55 = vector.multi_reduction <add>, %54, %cst_53 [1] : vector<16x16xf32> to vector<16xf32>
    %56 = vector.shape_cast %55 : vector<16xf32> to vector<16x1xf32>
    %cst_54 = arith.constant 3.200000e+01 : f32
    %57 = vector.broadcast %cst_54 : f32 to vector<16x1xf32>
    %58 = arith.divf %56, %57 : vector<16x1xf32>
    %cst_55 = arith.constant 9.99999974E-6 : f32
    %59 = vector.broadcast %cst_55 : f32 to vector<16x1xf32>
    %60 = arith.addf %58, %59 : vector<16x1xf32>
    %61 = math.rsqrt %60 : vector<16x1xf32>
    %62 = vector.broadcast %61 : vector<16x1xf32> to vector<16x16xf32>
    %63 = arith.mulf %51, %62 : vector<16x16xf32>
    %c0_56 = arith.constant 0 : index
    %c0_57 = arith.constant 0 : index
    %64 = vector.load %arg9[%c0_56, %c0_57] : memref<16x1xf32, #tpu.memory_space<vmem>>, vector<16x1xf32>
    %65 = vector.broadcast %64 : vector<16x1xf32> to vector<16x16xf32>
    %66 = arith.mulf %63, %65 : vector<16x16xf32>
    %c0_58 = arith.constant 0 : index
    %c0_59 = arith.constant 0 : index
    %67 = vector.load %arg10[%c0_58, %c0_59] : memref<16x1xf32, #tpu.memory_space<vmem>>, vector<16x1xf32>
    %68 = vector.broadcast %67 : vector<16x1xf32> to vector<16x16xf32>
    %69 = arith.addf %66, %68 : vector<16x16xf32>
    %c0_60 = arith.constant 0 : index
    %c0_61 = arith.constant 0 : index
    %c0_62 = arith.constant 0 : index
    %70 = vector.load %arg12[%c0_60, %c0_61, %c0_62] : memref<4x16x16xf32, #tpu.memory_space<vmem>>, vector<1x16x16xf32>
    %71 = vector.shape_cast %70 : vector<1x16x16xf32> to vector<16x16xf32>
    %cst_63 = arith.constant dense<0.000000e+00> : vector<16x16xf32>
    %72 = tpu.matmul %71, %69, %cst_63 {dimension_numbers = #tpu.dot_dimension_numbers<[1], [0], [0], [1], [0, 0, 1, 1], [], []>} : vector<16x16xf32>, vector<16x16xf32>, vector<16x16xf32> -> vector<16x16xf32>
    %c0_64 = arith.constant 0 : index
    %c0_65 = arith.constant 0 : index
    %c0_66 = arith.constant 0 : index
    %73 = vector.load %arg13[%c0_64, %c0_65, %c0_66] : memref<4x16x32xf32, #tpu.memory_space<vmem>>, vector<1x16x32xf32>
    %74 = vector.shape_cast %73 : vector<1x16x32xf32> to vector<16x32xf32>
    %cst_67 = arith.constant dense<0.000000e+00> : vector<16x32xf32>
    %75 = tpu.matmul %72, %74, %cst_67 {dimension_numbers = #tpu.dot_dimension_numbers<[1], [0], [0], [1], [0, 0, 1, 1], [], []>} : vector<16x16xf32>, vector<16x32xf32>, vector<16x32xf32> -> vector<16x32xf32>
    %c1_68 = arith.constant 1 : index
    %c0_69 = arith.constant 0 : index
    %c0_70 = arith.constant 0 : index
    %76 = vector.load %arg12[%c1_68, %c0_69, %c0_70] : memref<4x16x16xf32, #tpu.memory_space<vmem>>, vector<1x16x16xf32>
    %77 = vector.shape_cast %76 : vector<1x16x16xf32> to vector<16x16xf32>
    %cst_71 = arith.constant dense<0.000000e+00> : vector<16x16xf32>
    %78 = tpu.matmul %77, %69, %cst_71 {dimension_numbers = #tpu.dot_dimension_numbers<[1], [0], [0], [1], [0, 0, 1, 1], [], []>} : vector<16x16xf32>, vector<16x16xf32>, vector<16x16xf32> -> vector<16x16xf32>
    %c1_72 = arith.constant 1 : index
    %c0_73 = arith.constant 0 : index
    %c0_74 = arith.constant 0 : index
    %79 = vector.load %arg13[%c1_72, %c0_73, %c0_74] : memref<4x16x32xf32, #tpu.memory_space<vmem>>, vector<1x16x32xf32>
    %80 = vector.shape_cast %79 : vector<1x16x32xf32> to vector<16x32xf32>
    %cst_75 = arith.constant dense<0.000000e+00> : vector<16x32xf32>
    %81 = tpu.matmul %78, %80, %cst_75 {dimension_numbers = #tpu.dot_dimension_numbers<[1], [0], [0], [1], [0, 0, 1, 1], [], []>} : vector<16x16xf32>, vector<16x32xf32>, vector<16x32xf32> -> vector<16x32xf32>
    %82 = arith.addf %75, %81 : vector<16x32xf32>
    %c2_76 = arith.constant 2 : index
    %c0_77 = arith.constant 0 : index
    %c0_78 = arith.constant 0 : index
    %83 = vector.load %arg12[%c2_76, %c0_77, %c0_78] : memref<4x16x16xf32, #tpu.memory_space<vmem>>, vector<1x16x16xf32>
    %84 = vector.shape_cast %83 : vector<1x16x16xf32> to vector<16x16xf32>
    %cst_79 = arith.constant dense<0.000000e+00> : vector<16x16xf32>
    %85 = tpu.matmul %84, %69, %cst_79 {dimension_numbers = #tpu.dot_dimension_numbers<[1], [0], [0], [1], [0, 0, 1, 1], [], []>} : vector<16x16xf32>, vector<16x16xf32>, vector<16x16xf32> -> vector<16x16xf32>
    %c2_80 = arith.constant 2 : index
    %c0_81 = arith.constant 0 : index
    %c0_82 = arith.constant 0 : index
    %86 = vector.load %arg13[%c2_80, %c0_81, %c0_82] : memref<4x16x32xf32, #tpu.memory_space<vmem>>, vector<1x16x32xf32>
    %87 = vector.shape_cast %86 : vector<1x16x32xf32> to vector<16x32xf32>
    %cst_83 = arith.constant dense<0.000000e+00> : vector<16x32xf32>
    %88 = tpu.matmul %85, %87, %cst_83 {dimension_numbers = #tpu.dot_dimension_numbers<[1], [0], [0], [1], [0, 0, 1, 1], [], []>} : vector<16x16xf32>, vector<16x32xf32>, vector<16x32xf32> -> vector<16x32xf32>
    %89 = arith.addf %82, %88 : vector<16x32xf32>
    %c3_84 = arith.constant 3 : index
    %c0_85 = arith.constant 0 : index
    %c0_86 = arith.constant 0 : index
    %90 = vector.load %arg12[%c3_84, %c0_85, %c0_86] : memref<4x16x16xf32, #tpu.memory_space<vmem>>, vector<1x16x16xf32>
    %91 = vector.shape_cast %90 : vector<1x16x16xf32> to vector<16x16xf32>
    %cst_87 = arith.constant dense<0.000000e+00> : vector<16x16xf32>
    %92 = tpu.matmul %91, %69, %cst_87 {dimension_numbers = #tpu.dot_dimension_numbers<[1], [0], [0], [1], [0, 0, 1, 1], [], []>} : vector<16x16xf32>, vector<16x16xf32>, vector<16x16xf32> -> vector<16x16xf32>
    %c3_88 = arith.constant 3 : index
    %c0_89 = arith.constant 0 : index
    %c0_90 = arith.constant 0 : index
    %93 = vector.load %arg13[%c3_88, %c0_89, %c0_90] : memref<4x16x32xf32, #tpu.memory_space<vmem>>, vector<1x16x32xf32>
    %94 = vector.shape_cast %93 : vector<1x16x32xf32> to vector<16x32xf32>
    %cst_91 = arith.constant dense<0.000000e+00> : vector<16x32xf32>
    %95 = tpu.matmul %92, %94, %cst_91 {dimension_numbers = #tpu.dot_dimension_numbers<[1], [0], [0], [1], [0, 0, 1, 1], [], []>} : vector<16x16xf32>, vector<16x32xf32>, vector<16x32xf32> -> vector<16x32xf32>
    %96 = arith.addf %89, %95 : vector<16x32xf32>
    %c0_92 = arith.constant 0 : index
    %c0_93 = arith.constant 0 : index
    %97 = vector.load %arg14[%c0_92, %c0_93] : memref<16x1xf32, #tpu.memory_space<vmem>>, vector<16x1xf32>
    %98 = vector.broadcast %97 : vector<16x1xf32> to vector<16x32xf32>
    %99 = arith.addf %96, %98 : vector<16x32xf32>
    %cst_94 = arith.constant 0.000000e+00 : f32
    %100 = vector.broadcast %cst_94 : f32 to vector<16x32xf32>
    %101 = arith.maximumf %99, %100 : vector<16x32xf32>
    %c0_95 = arith.constant 0 : index
    %c0_96 = arith.constant 0 : index
    %102 = vector.load %arg17[%c0_95, %c0_96] : memref<16x16xf32, #tpu.memory_space<vmem>>, vector<16x16xf32>
    %cst_97 = arith.constant dense<0.000000e+00> : vector<16x32xf32>
    %103 = tpu.matmul %102, %101, %cst_97 {dimension_numbers = #tpu.dot_dimension_numbers<[1], [0], [0], [1], [0, 0, 1, 1], [], []>} : vector<16x16xf32>, vector<16x32xf32>, vector<16x32xf32> -> vector<16x32xf32>
    %cst_98 = arith.constant dense<0.000000e+00> : vector<16xf32>
    %104 = vector.multi_reduction <add>, %103, %cst_98 [1] : vector<16x32xf32> to vector<16xf32>
    %105 = vector.shape_cast %104 : vector<16xf32> to vector<16x1xf32>
    %cst_99 = arith.constant 6.400000e+01 : f32
    %106 = vector.broadcast %cst_99 : f32 to vector<16x1xf32>
    %107 = arith.divf %105, %106 : vector<16x1xf32>
    %108 = vector.broadcast %107 : vector<16x1xf32> to vector<16x32xf32>
    %109 = arith.subf %101, %108 : vector<16x32xf32>
    %c0_100 = arith.constant 0 : index
    %c0_101 = arith.constant 0 : index
    %110 = vector.load %arg17[%c0_100, %c0_101] : memref<16x16xf32, #tpu.memory_space<vmem>>, vector<16x16xf32>
    %111 = arith.mulf %109, %109 : vector<16x32xf32>
    %cst_102 = arith.constant dense<0.000000e+00> : vector<16x32xf32>
    %112 = tpu.matmul %110, %111, %cst_102 {dimension_numbers = #tpu.dot_dimension_numbers<[1], [0], [0], [1], [0, 0, 1, 1], [], []>} : vector<16x16xf32>, vector<16x32xf32>, vector<16x32xf32> -> vector<16x32xf32>
    %cst_103 = arith.constant dense<0.000000e+00> : vector<16xf32>
    %113 = vector.multi_reduction <add>, %112, %cst_103 [1] : vector<16x32xf32> to vector<16xf32>
    %114 = vector.shape_cast %113 : vector<16xf32> to vector<16x1xf32>
    %cst_104 = arith.constant 6.400000e+01 : f32
    %115 = vector.broadcast %cst_104 : f32 to vector<16x1xf32>
    %116 = arith.divf %114, %115 : vector<16x1xf32>
    %cst_105 = arith.constant 9.99999974E-6 : f32
    %117 = vector.broadcast %cst_105 : f32 to vector<16x1xf32>
    %118 = arith.addf %116, %117 : vector<16x1xf32>
    %119 = math.rsqrt %118 : vector<16x1xf32>
    %120 = vector.broadcast %119 : vector<16x1xf32> to vector<16x32xf32>
    %121 = arith.mulf %109, %120 : vector<16x32xf32>
    %c0_106 = arith.constant 0 : index
    %c0_107 = arith.constant 0 : index
    %122 = vector.load %arg15[%c0_106, %c0_107] : memref<16x1xf32, #tpu.memory_space<vmem>>, vector<16x1xf32>
    %123 = vector.broadcast %122 : vector<16x1xf32> to vector<16x32xf32>
    %124 = arith.mulf %121, %123 : vector<16x32xf32>
    %c0_108 = arith.constant 0 : index
    %c0_109 = arith.constant 0 : index
    %125 = vector.load %arg16[%c0_108, %c0_109] : memref<16x1xf32, #tpu.memory_space<vmem>>, vector<16x1xf32>
    %126 = vector.broadcast %125 : vector<16x1xf32> to vector<16x32xf32>
    %127 = arith.addf %124, %126 : vector<16x32xf32>
    %c0_110 = arith.constant 0 : index
    %c0_111 = arith.constant 0 : index
    %c0_112 = arith.constant 0 : index
    %128 = vector.load %arg18[%c0_110, %c0_111, %c0_112] : memref<4x8x16xf32, #tpu.memory_space<vmem>>, vector<1x8x16xf32>
    %129 = vector.shape_cast %128 : vector<1x8x16xf32> to vector<8x16xf32>
    %cst_113 = arith.constant dense<0.000000e+00> : vector<8x32xf32>
    %130 = tpu.matmul %129, %127, %cst_113 {dimension_numbers = #tpu.dot_dimension_numbers<[1], [0], [0], [1], [0, 0, 1, 1], [], []>} : vector<8x16xf32>, vector<16x32xf32>, vector<8x32xf32> -> vector<8x32xf32>
    %c0_114 = arith.constant 0 : index
    %c0_115 = arith.constant 0 : index
    %c0_116 = arith.constant 0 : index
    %131 = vector.load %arg19[%c0_114, %c0_115, %c0_116] : memref<4x32x64xf32, #tpu.memory_space<vmem>>, vector<1x32x64xf32>
    %132 = vector.shape_cast %131 : vector<1x32x64xf32> to vector<32x64xf32>
    %cst_117 = arith.constant dense<0.000000e+00> : vector<8x64xf32>
    %133 = tpu.matmul %130, %132, %cst_117 {dimension_numbers = #tpu.dot_dimension_numbers<[1], [0], [0], [1], [0, 0, 1, 1], [], []>} : vector<8x32xf32>, vector<32x64xf32>, vector<8x64xf32> -> vector<8x64xf32>
    %c1_118 = arith.constant 1 : index
    %c0_119 = arith.constant 0 : index
    %c0_120 = arith.constant 0 : index
    %134 = vector.load %arg18[%c1_118, %c0_119, %c0_120] : memref<4x8x16xf32, #tpu.memory_space<vmem>>, vector<1x8x16xf32>
    %135 = vector.shape_cast %134 : vector<1x8x16xf32> to vector<8x16xf32>
    %cst_121 = arith.constant dense<0.000000e+00> : vector<8x32xf32>
    %136 = tpu.matmul %135, %127, %cst_121 {dimension_numbers = #tpu.dot_dimension_numbers<[1], [0], [0], [1], [0, 0, 1, 1], [], []>} : vector<8x16xf32>, vector<16x32xf32>, vector<8x32xf32> -> vector<8x32xf32>
    %c1_122 = arith.constant 1 : index
    %c0_123 = arith.constant 0 : index
    %c0_124 = arith.constant 0 : index
    %137 = vector.load %arg19[%c1_122, %c0_123, %c0_124] : memref<4x32x64xf32, #tpu.memory_space<vmem>>, vector<1x32x64xf32>
    %138 = vector.shape_cast %137 : vector<1x32x64xf32> to vector<32x64xf32>
    %cst_125 = arith.constant dense<0.000000e+00> : vector<8x64xf32>
    %139 = tpu.matmul %136, %138, %cst_125 {dimension_numbers = #tpu.dot_dimension_numbers<[1], [0], [0], [1], [0, 0, 1, 1], [], []>} : vector<8x32xf32>, vector<32x64xf32>, vector<8x64xf32> -> vector<8x64xf32>
    %140 = arith.addf %133, %139 : vector<8x64xf32>
    %c2_126 = arith.constant 2 : index
    %c0_127 = arith.constant 0 : index
    %c0_128 = arith.constant 0 : index
    %141 = vector.load %arg18[%c2_126, %c0_127, %c0_128] : memref<4x8x16xf32, #tpu.memory_space<vmem>>, vector<1x8x16xf32>
    %142 = vector.shape_cast %141 : vector<1x8x16xf32> to vector<8x16xf32>
    %cst_129 = arith.constant dense<0.000000e+00> : vector<8x32xf32>
    %143 = tpu.matmul %142, %127, %cst_129 {dimension_numbers = #tpu.dot_dimension_numbers<[1], [0], [0], [1], [0, 0, 1, 1], [], []>} : vector<8x16xf32>, vector<16x32xf32>, vector<8x32xf32> -> vector<8x32xf32>
    %c2_130 = arith.constant 2 : index
    %c0_131 = arith.constant 0 : index
    %c0_132 = arith.constant 0 : index
    %144 = vector.load %arg19[%c2_130, %c0_131, %c0_132] : memref<4x32x64xf32, #tpu.memory_space<vmem>>, vector<1x32x64xf32>
    %145 = vector.shape_cast %144 : vector<1x32x64xf32> to vector<32x64xf32>
    %cst_133 = arith.constant dense<0.000000e+00> : vector<8x64xf32>
    %146 = tpu.matmul %143, %145, %cst_133 {dimension_numbers = #tpu.dot_dimension_numbers<[1], [0], [0], [1], [0, 0, 1, 1], [], []>} : vector<8x32xf32>, vector<32x64xf32>, vector<8x64xf32> -> vector<8x64xf32>
    %147 = arith.addf %140, %146 : vector<8x64xf32>
    %c3_134 = arith.constant 3 : index
    %c0_135 = arith.constant 0 : index
    %c0_136 = arith.constant 0 : index
    %148 = vector.load %arg18[%c3_134, %c0_135, %c0_136] : memref<4x8x16xf32, #tpu.memory_space<vmem>>, vector<1x8x16xf32>
    %149 = vector.shape_cast %148 : vector<1x8x16xf32> to vector<8x16xf32>
    %cst_137 = arith.constant dense<0.000000e+00> : vector<8x32xf32>
    %150 = tpu.matmul %149, %127, %cst_137 {dimension_numbers = #tpu.dot_dimension_numbers<[1], [0], [0], [1], [0, 0, 1, 1], [], []>} : vector<8x16xf32>, vector<16x32xf32>, vector<8x32xf32> -> vector<8x32xf32>
    %c3_138 = arith.constant 3 : index
    %c0_139 = arith.constant 0 : index
    %c0_140 = arith.constant 0 : index
    %151 = vector.load %arg19[%c3_138, %c0_139, %c0_140] : memref<4x32x64xf32, #tpu.memory_space<vmem>>, vector<1x32x64xf32>
    %152 = vector.shape_cast %151 : vector<1x32x64xf32> to vector<32x64xf32>
    %cst_141 = arith.constant dense<0.000000e+00> : vector<8x64xf32>
    %153 = tpu.matmul %150, %152, %cst_141 {dimension_numbers = #tpu.dot_dimension_numbers<[1], [0], [0], [1], [0, 0, 1, 1], [], []>} : vector<8x32xf32>, vector<32x64xf32>, vector<8x64xf32> -> vector<8x64xf32>
    %154 = arith.addf %147, %153 : vector<8x64xf32>
    %c0_142 = arith.constant 0 : index
    %c0_143 = arith.constant 0 : index
    %155 = vector.load %arg20[%c0_142, %c0_143] : memref<8x1xf32, #tpu.memory_space<vmem>>, vector<8x1xf32>
    %156 = vector.broadcast %155 : vector<8x1xf32> to vector<8x64xf32>
    %157 = arith.addf %154, %156 : vector<8x64xf32>
    %cst_144 = arith.constant 0.000000e+00 : f32
    %158 = vector.broadcast %cst_144 : f32 to vector<8x64xf32>
    %159 = arith.subf %158, %157 : vector<8x64xf32>
    %160 = math.exp %159 : vector<8x64xf32>
    %cst_145 = arith.constant 1.000000e+00 : f32
    %161 = vector.broadcast %cst_145 : f32 to vector<8x64xf32>
    %162 = arith.addf %161, %160 : vector<8x64xf32>
    %cst_146 = arith.constant 1.000000e+00 : f32
    %163 = vector.broadcast %cst_146 : f32 to vector<8x64xf32>
    %164 = arith.divf %163, %162 : vector<8x64xf32>
    %cst_147 = arith.constant dense<0.000000e+00> : vector<8xf32>
    %165 = vector.multi_reduction <add>, %164, %cst_147 [1] : vector<8x64xf32> to vector<8xf32>
    %166 = vector.shape_cast %165 : vector<8xf32> to vector<8x1xf32>
    %cst_148 = arith.constant 1.000000e-01 : f32
    %167 = vector.broadcast %cst_148 : f32 to vector<8x1xf32>
    %168 = arith.mulf %166, %167 : vector<8x1xf32>
    %169 = vector.broadcast %168 : vector<8x1xf32> to vector<8x64xf32>
    %170 = arith.divf %164, %169 : vector<8x64xf32>
    %c0_149 = arith.constant 0 : index
    %c0_150 = arith.constant 0 : index
    %171 = vector.load %arg21[%c0_149, %c0_150] : memref<8x64xf32, #tpu.memory_space<vmem>>, vector<8x64xf32>
    tpu.vector_store %arg21[%c0_149, %c0_150], %170 {strides = array<i32>} : memref<8x64xf32, #tpu.memory_space<vmem>>, vector<8x64xf32>,
    return
  }
}

</mosaic_0001>

<bundles_post_ra>
// kernel: _lambda_.1
= control target key start
LH: loop header
LB: loop body
LE: loop exit
PB: predicated region body
PF: predicated region fallthrough
CT: control target
= control target key end

     0   :  { %s2318_s0 = inlined_call_operand.hbm [shape: f32[2,6], index: 0, kind: input, shape index: {}]   ;;  %s2319_s1 = inlined_call_operand.hbm [shape: f32[6,64], index: 1, kind: input, shape index: {}]   ;;  %s2320_s2 = inlined_call_operand.hbm [shape: f32[1,64], index: 2, kind: input, shape index: {}]   ;;  %s2321_s3 = inlined_call_operand.hbm [shape: f32[16,2], index: 3, kind: input, shape index: {}]   ;;  %s2322_s4 = inlined_call_operand.hbm [shape: f32[16,64], index: 4, kind: input, shape index: {}]   ;;  %s2323_s5 = inlined_call_operand.hbm [shape: f32[64,8], index: 5, kind: input, shape index: {}]   ;;  %s2324_s6 = inlined_call_operand.hbm [shape: f32[4,16,16], index: 6, kind: input, shape index: {}]   ;;  %s2325_s7 = inlined_call_operand.hbm [shape: f32[4,8,16], index: 7, kind: input, shape index: {}]   ;;  %s2326_s8 = inlined_call_operand.hbm [shape: f32[16,1], index: 8, kind: input, shape index: {}]   ;;  %s2327_s9 = inlined_call_operand.vmem [shape: f32[16,1], index: 9, kind: input, shape index: {}, may-alias: {9,15}]   ;;  %s2328_s10 = inlined_call_operand.vmem [shape: f32[16,1], index: 10, kind: input, shape index: {}, may-alias: {10,16}]   ;;  %s2329_s11 = inlined_call_operand.hbm [shape: f32[16,16], index: 11, kind: input, shape index: {}, may-alias: {11,17}]   ;;  %s2330_s12 = inlined_call_operand.hbm [shape: f32[4,16,16], index: 12, kind: input, shape index: {}]   ;;  %s2331_s13 = inlined_call_operand.hbm [shape: f32[4,16,32], index: 13, kind: input, shape index: {}]   ;;  %s2332_s14 = inlined_call_operand.vmem [shape: f32[16,1], index: 14, kind: input, shape index: {}]   ;;  %s2333_s15 = inlined_call_operand.vmem [shape: f32[16,1], index: 15, kind: input, shape index: {}, may-alias: {9,15}]   ;;  %s2334_s16 = inlined_call_operand.vmem [shape: f32[16,1], index: 16, kind: input, shape index: {}, may-alias: {10,16}]   ;;  %s2335_s17 = inlined_call_operand.hbm [shape: f32[16,16], index: 17, kind: input, shape index: {}, may-alias: {11,17}]   ;;  %s2336_s18 = inlined_call_operand.vmem [shape: f32[4,8,16], index: 18, kind: input, shape index: {}]   ;;  %s2337_s19 = inlined_call_operand.hbm [shape: f32[4,32,64], index: 19, kind: input, shape index: {}]   ;;  %s2338_s20 = inlined_call_operand.hbm [shape: f32[8,1], index: 20, kind: input, shape index: {}]   ;;  %s2339_s21 = inlined_call_operand.hbm [shape: f32[8,64], index: 21, kind: output, shape index: {}]  }
   0x1   :  { %2340 = sst [smem:[#allocation36_spill]] %s2318_s0 }
   0x2   :  { %2341 = sst [smem:[#allocation37_spill]] %s2319_s1 }
   0x3   :  { %2342 = sst [smem:[#allocation38_spill]] %s2320_s2 }
   0x4   :  { %2343 = sst [smem:[#allocation39_spill]] %s2321_s3 }
   0x5   :  { %2344 = sst [smem:[#allocation40_spill]] %s2322_s4 }
   0x6   :  { %2345 = sst [smem:[#allocation41_spill]] %s2323_s5 }
   0x7   :  { %2346 = sst [smem:[#allocation42_spill]] %s2339_s21 }
   0x8   :  { %26 = vsyncpa [#allocation3], 0 }
   0x9   :  { %27 = vsyncpa [#allocation6], 0 }
   0xa   :  { %28 = vsyncpa [#allocation9], 0 }
   0xb   :  { %29 = vsyncpa [#allocation12], 0 }
   0xc   :  { %30 = vsyncpa [#allocation15], 0 }
   0xd   :  { %31 = vsyncpa [#allocation18], 0 }
   0xe   :  { %32 = vsyncpa [#allocation21], 0 }
   0xf   :  { %33 = vsyncpa [#allocation24], 0  ;;  %s2347_s26 = sld [smem:[#allocation37_spill]] }
  0x15   :  { %s51_s27 = sshll.u32 %s2347_s26, 4  ;;  %s52_s27 = int_to_ptr.hbm [resolvable:$true] %s51_s27 }
  0x16   :  { %34 = vsyncpa [#allocation4], 0  ;;  %s2004_s3 = smov [#allocation5]   ;;  %s2348_s4 = sld [smem:[#allocation39_spill]] }
  0x17   :  { %s53_s28 = sshll.u32 %s2004_s3, 4  ;;  %s2005_s5 = smov [#allocation8]   ;;  %s54_s28 = int_to_ptr.vmem [resolvable:$true] %s53_s28 }
  0x18   :  { %56 = dma.hbm_to_vmem [thread:$0]  %s52_s27, 128, %s54_s28, [#allocation6]  }
  0x19   :  { %s74_s22 = sshll.u32 %s2005_s5, 4  ;;  %s2006_s23 = smov 128   ;;  %s75_s22 = int_to_ptr.vmem [resolvable:$true] %s74_s22 }
  0x1a   :  { %s2007_s1 = smov 8   ;;  %s2349_s25 = sld [smem:[#allocation41_spill]] }
  0x1b   :  { %s2008_s3 = smov [#allocation11]   ;;  %s124_s28 = sshll.u32 %s2325_s7, 4  ;;  %s125_s28 = int_to_ptr.hbm [resolvable:$true] %s124_s28 }
  0x1c   :  { %s72_s30 = sshll.u32 %s2348_s4, 4  ;;  %s100_s21 = sshll.u32 %s2008_s3, 4  ;;  %s73_s30 = int_to_ptr.hbm [resolvable:$true] %s72_s30  ;;  %s101_s21 = int_to_ptr.vmem [resolvable:$true] %s100_s21 }
  0x1d   :  { %80 = dma.hbm_to_vmem [thread:$0]  %s73_s30, 256, %s75_s22, [#allocation9], %s2006_s23, %s2006_s23, %s2007_s1  }
  0x1e   :  { %s2009_s0 = smov [#allocation14]   ;;  %s154_s22 = sshll.u32 %s2329_s11, 4  ;;  %s155_s22 = int_to_ptr.hbm [resolvable:$true] %s154_s22 }
  0x1f   :  { %s126_s4 = sshll.u32 %s2009_s0, 4  ;;  %s180_s7 = sshll.u32 %s2331_s13, 4  ;;  %s127_s4 = int_to_ptr.vmem [resolvable:$true] %s126_s4  ;;  %s181_s7 = int_to_ptr.hbm [resolvable:$true] %s180_s7 }
  0x20   :  { %s98_s26 = sshll.u32 %s2349_s25, 4  ;;  %s2010_s25 = smov [#allocation17]   ;;  %s99_s26 = int_to_ptr.hbm [resolvable:$true] %s98_s26 }
  0x21   :  { %106 = dma.hbm_to_vmem [thread:$0]  %s99_s26, 1024, %s101_s21, [#allocation12], %s2006_s23, %s2006_s23, %s2007_s1  }
  0x22   :  { %132 = dma.hbm_to_vmem [thread:$0]  %s125_s28, 512, %s127_s4, [#allocation15], %s2006_s23, %s2006_s23, %s2007_s1  }
  0x23   :  { %s156_s3 = sshll.u32 %s2010_s25, 4  ;;  %s2011_s21 = smov [#allocation20]   ;;  %s157_s3 = int_to_ptr.vmem [resolvable:$true] %s156_s3 }
  0x24   :  { %162 = dma.hbm_to_vmem [thread:$0]  %s155_s22, 256, %s157_s3, [#allocation18], %s2006_s23, %s2006_s23, %s2007_s1  }
  0x25   :  { %s182_s11 = sshll.u32 %s2011_s21, 4  ;;  %s214_s27 = sshll.u32 %s2337_s19, 4  ;;  %s183_s11 = int_to_ptr.vmem [resolvable:$true] %s182_s11  ;;  %s215_s27 = int_to_ptr.hbm [resolvable:$true] %s214_s27 }
  0x26   :  { %188 = dma.hbm_to_vmem [thread:$0]  %s181_s7, 1024, %s183_s11, [#allocation21], %s2006_s23, %s2006_s23, %s2007_s1  }
  0x27   :  { %s2350_s0 = sld [smem:[#allocation36_spill]]  ;;  %s2012_s30 = smov [#allocation23]  }
  0x28   :  { %s216_s5 = sshll.u32 %s2012_s30, 4  ;;  %s2013_s22 = smov [#allocation2]   ;;  %s217_s5 = int_to_ptr.vmem [resolvable:$true] %s216_s5 }
  0x29   :  { %222 = dma.hbm_to_vmem [thread:$0]  %s215_s27, 2048, %s217_s5, [#allocation24], %s2006_s23, %s2006_s23, %s2007_s1  }
  0x2a   :  { %s42_s19 = sshll.u32 %s2013_s22, 4  ;;  %s2351_s25 = sld [smem:[#allocation38_spill]]  ;;  %s43_s19 = int_to_ptr.vmem [resolvable:$true] %s42_s19 }
  0x2b   :  { %s2352_s11 = sld [smem:[#allocation40_spill]]  ;;  %s2014_s29 = smov [#allocation7]  }
  0x2c   :  { %s64_s13 = sshll.u32 %s2014_s29, 4  ;;  %s2015_s28 = smov [#allocation10]   ;;  %s65_s13 = int_to_ptr.vmem [resolvable:$true] %s64_s13 }
  0x2d   :  { %s40_s4 = sshll.u32 %s2350_s0, 4  ;;  %s87_s27 = sshll.u32 %s2015_s28, 4  ;;  %s41_s4 = int_to_ptr.hbm [resolvable:$true] %s40_s4  ;;  %s88_s27 = int_to_ptr.vmem [resolvable:$true] %s87_s27 }
  0x2e   :  { %45 = dma.hbm_to_vmem [thread:$0]  %s41_s4, 32, %s43_s19, [#allocation3]  }
  0x2f   :  { %s111_s5 = sshll.u32 %s2324_s6, 4  ;;  %s137_s19 = sshll.u32 %s2326_s8, 4  ;;  %s112_s5 = int_to_ptr.hbm [resolvable:$true] %s111_s5  ;;  %s138_s19 = int_to_ptr.hbm [resolvable:$true] %s137_s19 }
  0x30   :  { %s62_s3 = sshll.u32 %s2351_s25, 4  ;;  %s2016_s24 = smov [#allocation13]   ;;  %s63_s3 = int_to_ptr.hbm [resolvable:$true] %s62_s3 }
  0x31   :  { %s85_s26 = sshll.u32 %s2352_s11, 4  ;;  %s113_s2 = sshll.u32 %s2016_s24, 4  ;;  %s86_s26 = int_to_ptr.hbm [resolvable:$true] %s85_s26  ;;  %s114_s2 = int_to_ptr.vmem [resolvable:$true] %s113_s2 }
  0x32   :  { %67 = dma.hbm_to_vmem [thread:$0]  %s63_s3, 16, %s65_s13, [#allocation6]  }
  0x33   :  { %93 = dma.hbm_to_vmem [thread:$0]  %s86_s26, 256, %s88_s27, [#allocation9], %s2006_s23, %s2006_s23, %s2007_s1  }
  0x34   :  { %119 = dma.hbm_to_vmem [thread:$0]  %s112_s5, 1024, %s114_s2, [#allocation12], %s2006_s23, %s2006_s23, %s2007_s1  }
  0x35   :  { %s2017_s25 = smov [#allocation16]   ;;  %s167_s21 = sshll.u32 %s2330_s12, 4  ;;  %s168_s21 = int_to_ptr.hbm [resolvable:$true] %s167_s21 }
  0x36   :  { %s139_s6 = sshll.u32 %s2017_s25, 4  ;;  %s199_s26 = sshll.u32 %s2335_s17, 4  ;;  %s140_s6 = int_to_ptr.vmem [resolvable:$true] %s139_s6  ;;  %s200_s26 = int_to_ptr.hbm [resolvable:$true] %s199_s26 }
  0x37   :  { %145 = dma.hbm_to_vmem [thread:$0]  %s138_s19, 256, %s140_s6, [#allocation15], %s2006_s23, %s2006_s23, %s2007_s1  }
  0x38   :  { %s2018_s29 = smov [#allocation19]   ;;  %s2019_s28 = smov [#allocation22]  }
  0x39   :  { %s169_s13 = sshll.u32 %s2018_s29, 4  ;;  %s201_s12 = sshll.u32 %s2019_s28, 4  ;;  %s170_s13 = int_to_ptr.vmem [resolvable:$true] %s169_s13  ;;  %s202_s12 = int_to_ptr.vmem [resolvable:$true] %s201_s12 }
  0x3a   :  { %175 = dma.hbm_to_vmem [thread:$0]  %s168_s21, 1024, %s170_s13, [#allocation18], %s2006_s23, %s2006_s23, %s2007_s1  }
  0x3b   :  { %s228_s30 = sshll.u32 %s2338_s20, 4  ;;  %s2020_s17 = smov [#allocation25]   ;;  %s229_s30 = int_to_ptr.hbm [resolvable:$true] %s228_s30 }
  0x3c   :  { %207 = dma.hbm_to_vmem [thread:$0]  %s200_s26, 256, %s202_s12, [#allocation21], %s2006_s23, %s2006_s23, %s2007_s1  }
  0x3d   :  { %s230_s5 = sshll.u32 %s2020_s17, 4  ;;  %s231_s5 = int_to_ptr.vmem [resolvable:$true] %s230_s5 }
  0x3e   :  { %233 = dma.hbm_to_vmem [thread:$0]  %s229_s30, 128, %s231_s5, [#allocation24]  }
  0x3f   :  { %1986 = dma.done.wait [#allocation3], 32  }
  0x40   :  { %1987 = vsyncadd [#allocation3], 4294967264 }
  0x41   :  { %1988 = dma.done.wait [#allocation6], 144  }
  0x42   :  { %1989 = vsyncadd [#allocation6], 4294967152 }
  0x43   :  { %1990 = dma.done.wait [#allocation9], 512  }
  0x44   :  { %1991 = vsyncadd [#allocation9], 4294966784 }
  0x45   :  { %1992 = dma.done.wait [#allocation12], 2048  }
  0x46   :  { %1993 = vsyncadd [#allocation12], 4294965248 }
  0x47   :  { %1994 = dma.done.wait [#allocation15], 768  }
  0x48   :  { %1995 = vsyncadd [#allocation15], 4294966528 }
  0x49   :  { %1996 = dma.done.wait [#allocation18], 1280  }
  0x4a   :  { %1997 = vsyncadd [#allocation18], 4294966016 }
  0x4b   :  { %1998 = dma.done.wait [#allocation21], 1280  }
  0x4c   :  { %1999 = vsyncadd [#allocation21], 4294966016 }
  0x4d   :  { %2000 = dma.done.wait [#allocation24], 2176  }
  0x4e   :  { %2001 = vsyncadd [#allocation24], 4294965120  ;;  %vm304_vm0 = vcmask 1045504   ;;  %vm300_vm1 = vcmask 48128   ;;  %v295_v0 = vld [vmem:[#allocation5] sm:$0x3f] }
  0x4f   :  { %v294_v1 = vld [vmem:[#allocation2] sm:$0x3]  ;;  %1501 = vmatpush.msk.msra.mxu0 %vm304_vm0, %v295_v0  ;;  %v375_v2 = vld [vmem:[#allocation11 + $0x38] sm:$0xff]  ;;  %v373_v4 = vld [vmem:[#allocation11 + $0x28] sm:$0xff]  ;;  %vm337_vm2 = vcmask 1041408   ;;  %vm330_vm3 = vcmask 15360  }
  0x50   :  { %1502 = vmatmul.msk.f32.vlgmr.msra.gmra.mxu0 %vm300_vm1, %v294_v1  ;;  %v374_v3 = vld [vmem:[#allocation11 + $0x30] sm:$0xff]  ;;  %391 = vmatpush.msra.mxu2 %v375_v2  ;;  %v372_v5 = vld [vmem:[#allocation11 + $0x20] sm:$0xff]  ;;  %v371_v6 = vld [vmem:[#allocation11 + $0x18] sm:$0xff]  ;;  %vm376_vm4 = vcmask 523264   ;;  %vm408_vm5 = vcmask 130048   ;;  %v2021_v33 = vmov 0  }
  0x51   :  { %v370_v7 = vld [vmem:[#allocation11 + $0x10] sm:$0xff]  ;;  %v1583_v8 = vld [vmem:[#allocation7] ss:$0 sm:$0xff]  ;;  %v328_v11 = vld [vmem:[#allocation8] sm:$0xff]  ;;  %1580 = vset.pattern.permute.xlu0 %v2021_v33  ;;  %1581 = vset.pattern.permute.xlu1 %v2021_v33  ;;  %vm473_vm6 = vcmask 64512   ;;  %vm1116_vm14 = vcmask 261120  }
  0x52   :  { %392 = vmatpush.msra.mxu2 %v374_v3  ;;  %v329_v12 = vld [vmem:[#allocation8 + $0x8] sm:$0xff]  ;;  %v368_v14 = vld [vmem:[#allocation11] sm:$0xff]  ;;  %v364_v15 = vld [vmem:[#allocation10] sm:$0xff]  ;;  %1582 = vset.pattern.permute.xlu2 %v2021_v33  ;;  %s2353_s23 = sld [smem:[#allocation42_spill]] }
  0x53   :  { %v369_v13 = vld [vmem:[#allocation11 + $0x8] sm:$0xff]  ;;  %v365_v18 = vld [vmem:[#allocation10 + $0x8] sm:$0xff]  ;;  %v406_v24 = vld [vmem:[#allocation13] sm:$0xff] }
  0x54   :  { %393 = vmatpush.msra.mxu2 %v373_v4  ;;  %v472_v21 = vld [vmem:[#allocation14 + $0x8] sm:$0xff]  ;;  %v440_v25 = vld [vmem:[#allocation13 + $0x10] sm:$0xff]  ;;  %v441_v27 = vld [vmem:[#allocation13 + $0x18] sm:$0xff] }
  0x55   :  { %v407_v26 = vld [vmem:[#allocation13 + $0x8] sm:$0xff]  ;;  %v533_v28 = vld [vmem:[#allocation13 + $0x20] sm:$0xff]  ;;  %v565_v31 = vld [vmem:[#allocation14 + $0x10] sm:$0xff] }
  0x56   :  { %394 = vmatpush.msra.mxu2 %v372_v5  ;;  %v534_v29 = vld [vmem:[#allocation13 + $0x28] sm:$0xff]  ;;  %v438_v30 = vld [vmem:[#allocation14] sm:$0xff]  ;;  %v598_v38 = vld [vmem:[#allocation13 + $0x30] sm:$0xff] }
  0x57   :  { %v663_v32 = vld [vmem:[#allocation16 + $0x8] sm:$0xff]  ;;  %v599_v40 = vld [vmem:[#allocation13 + $0x38] sm:$0xff]  ;;  %v662_v42 = vld [vmem:[#allocation16] sm:$0xff] }
  0x58   :  { %395 = vmatpush.msra.mxu2 %v371_v6  ;;  %671 = vperm.xlu0 %1580, %v663_v32   ;;  %v784_v43 = vld [vmem:[%s2327_s9 + $0x8] sm:$0xff]  ;;  %v797_v45 = vld [vmem:[%s2328_s10] sm:$0xff]  ;;  %s1484_s1 = sshll.u32 %s2353_s23, 4  ;;  %s1485_s1 = int_to_ptr.hbm [resolvable:$true] %s1484_s1 }
  0x59   :  { %v630_v44 = vld [vmem:[#allocation14 + $0x18] sm:$0xff]  ;;  %v678_v6 = vld [vmem:[#allocation17] sm:$0xff] }
  0x5a   :  { %396 = vmatpush.msra.mxu2 %v370_v7  ;;  %v1070_v46 = vld [vmem:[%s2332_s14 + $0x8] sm:$0xff]  ;;  %v1069_v48 = vld [vmem:[%s2332_s14] sm:$0xff] }
  0x5b   :  { %v679_v7 = vld [vmem:[#allocation17 + $0x8] sm:$0xff] }
  0x5c   :  { %397 = vmatpush.msra.mxu2 %v369_v13  ;;  %v798_v32 = vld [vmem:[%s2328_s10 + $0x8] sm:$0xff] }
  0x5d   :  { %v878_v33 = vld [vmem:[#allocation20 + $0x18] sm:$0xff] }
  0x5e   :  { %398 = vmatpush.msra.mxu2 %v368_v14 }
  0x60   :  { %587 = vmatpush.msrb.mxu2 %v565_v31  ;;  %666 = vperm.xlu0 %1580, %v662_v42  }
  0x68   :  { %792 = vperm.xlu0 %1580, %v784_v43  }
  0x70   :  { %801 = vperm.xlu0 %1580, %v797_v45  }
  0x78   :  { %1078 = vperm.xlu0 %1580, %v1070_v46  }
  0x80   :  { %1073 = vperm.xlu0 %1580, %v1069_v48  }
  0xca   :  { %v672_v55 = vpop.permute.xlu0 %671 }
  0xcd   :  { %v325_v9 = vpop.f32.mrf.mxu0 }
  0xce   :  { %v326_v10 = vadd.f32 %v1583_v8, %v325_v9 }
  0xd0   :  { %1503 = vmatpush.msk.msra.mxu1 %vm337_vm2, %v326_v10 }
  0xd1   :  { %1504 = vmatmul.msk.f32.vlgmr.msra.gmra.mxu1 %vm330_vm3, %v328_v11 }
  0xd2   :  { %495 = vmatpush.msrb.mxu1 %v472_v21  ;;  %v667_v1 = vpop.permute.xlu0 %666 }
  0xd9   :  { %1505 = vmatmul.msk.f32.gmra.mxu1 %vm330_vm3, %v329_v12  ;;  %v2022_v12 = vmov 32.0  }
  0xda   :  { %1584 = vrcp.f32 %v2022_v12 }
  0xe0   :  { %v1585_v13 = vpop.eup %1584 }
  0xe1   :  { %v716_v14 = vmul.f32 32.0, %v1585_v13  ;;  %vm720_vm7 = vweird.f32 %v1585_v13 }
 0x14e   :  { %v358_v16 = vpop.f32.mrf.mxu1 }
 0x14f   :  { %v366_v17 = vmul.f32 %v364_v15, %v358_v16  ;;  %v717_v15 = vsub.f32 1.0, %v716_v14 }
 0x151   :  { %1506 = vmatmul.msk.f32.vlgmr.msra.gmra.mxu2 %vm376_vm4, %v366_v17  ;;  %v718_v16 = vmul.f32 %v1585_v13, %v717_v15 }
 0x153   :  { %v719_v17 = vadd.f32 %v1585_v13, %v718_v16  ;;  %v1004_v16 = vld [vmem:[#allocation19 + $0x30] sm:$0xff] }
 0x156   :  { %v361_v19 = vpop.f32.mrf.mxu1 }
 0x157   :  { %v367_v20 = vmul.f32 %v365_v18, %v361_v19  ;;  %v721_v18 = vsel %vm720_vm7, %v1585_v13, %v719_v17 }
 0x159   :  { %1507 = vmatmul.msk.f32.gmra.mxu2 %vm376_vm4, %v367_v20 }
 0x1d4   :  { %v400_v22 = vpop.f32.mrf.mxu2 }
 0x1dc   :  { %v403_v23 = vpop.f32.mrf.mxu2 }
 0x1dd   :  { %429 = vmatpush.msra.mxu3 %v403_v23  ;;  %462 = vmatpush.msrb.mxu0 %v403_v23 }
 0x1de   :  { %620 = vmatpush.msra.mxu1 %v403_v23 }
 0x1df   :  { %430 = vmatpush.msra.mxu3 %v400_v22  ;;  %463 = vmatpush.msrb.mxu0 %v400_v22 }
 0x1e0   :  { %621 = vmatpush.msra.mxu1 %v400_v22  ;;  %1508 = vmatmul.msk.f32.vlgmr.msra.gmra.mxu3 %vm408_vm5, %v406_v24 }
 0x1e1   :  { %1510 = vmatmul.msk.f32.vlgmr.msrb.gmra.mxu0 %vm408_vm5, %v440_v25  ;;  %524 = vmatpush.msrb.mxu3 %v438_v30 }
 0x1e2   :  { %555 = vmatpush.msra.mxu0 %v403_v23 }
 0x1e3   :  { %652 = vmatpush.msra.mxu3 %v630_v44 }
 0x1e4   :  { %556 = vmatpush.msra.mxu0 %v400_v22 }
 0x1e8   :  { %1509 = vmatmul.msk.f32.gmra.mxu3 %vm408_vm5, %v407_v26 }
 0x1e9   :  { %1511 = vmatmul.msk.f32.gmra.mxu0 %vm408_vm5, %v441_v27  ;;  %v783_v27 = vld [vmem:[%s2327_s9] sm:$0xff] }
 0x1f1   :  { %1516 = vmatmul.msk.f32.vlgmr.msra.gmra.mxu0 %vm408_vm5, %v533_v28 }
 0x1f9   :  { %1517 = vmatmul.msk.f32.gmra.mxu0 %vm408_vm5, %v534_v29 }
 0x25e   :  { %v465_v34 = vpop.f32.mrf.mxu0 }
 0x25f   :  { %1512 = vmatmul.msk.f32.vlgmr.msrb.gmra.mxu1 %vm473_vm6, %v465_v34 }
 0x263   :  { %v432_v35 = vpop.f32.mrf.mxu3 }
 0x264   :  { %1514 = vmatmul.msk.f32.vlgmr.msrb.gmra.mxu3 %vm473_vm6, %v432_v35 }
 0x266   :  { %v468_v36 = vpop.f32.mrf.mxu0 }
 0x267   :  { %1513 = vmatmul.msk.f32.gmra.mxu1 %vm473_vm6, %v468_v36 }
 0x26b   :  { %v435_v37 = vpop.f32.mrf.mxu3 }
 0x26c   :  { %1515 = vmatmul.msk.f32.gmra.mxu3 %vm473_vm6, %v435_v37  ;;  %v877_v37 = vld [vmem:[#allocation20 + $0x10] sm:$0xff] }
 0x26e   :  { %v558_v39 = vpop.f32.mrf.mxu0 }
 0x26f   :  { %1518 = vmatmul.msk.f32.vlgmr.msrb.gmra.mxu2 %vm473_vm6, %v558_v39  ;;  %1520 = vmatmul.msk.f32.vlgmr.msra.gmra.mxu1 %vm408_vm5, %v598_v38 }
 0x276   :  { %v561_v41 = vpop.f32.mrf.mxu0 }
 0x277   :  { %1519 = vmatmul.msk.f32.gmra.mxu2 %vm473_vm6, %v561_v41  ;;  %1521 = vmatmul.msk.f32.gmra.mxu1 %vm408_vm5, %v599_v40 }
 0x2dc   :  { %v497_v47 = vpop.f32.mrf.mxu1 }
 0x2e4   :  { %v500_v49 = vpop.f32.mrf.mxu1 }
 0x2e7   :  { %v526_v52 = vpop.f32.mrf.mxu3 }
 0x2e8   :  { %v527_v57 = vadd.f32 %v526_v52, %v497_v47 }
 0x2ec   :  { %v623_v50 = vpop.f32.mrf.mxu1 }
 0x2ed   :  { %1522 = vmatmul.msk.f32.vlgmr.msra.gmra.mxu3 %vm473_vm6, %v623_v50 }
 0x2ef   :  { %v529_v53 = vpop.f32.mrf.mxu3 }
 0x2f0   :  { %v530_v59 = vadd.f32 %v529_v53, %v500_v49 }
 0x2f2   :  { %v589_v54 = vpop.f32.mrf.mxu2 }
 0x2f3   :  { %v595_v60 = vadd.f32 %v589_v54, %v527_v57 }
 0x2f4   :  { %v626_v51 = vpop.f32.mrf.mxu1 }
 0x2f5   :  { %1523 = vmatmul.msk.f32.gmra.mxu3 %vm473_vm6, %v626_v51  ;;  %v793_v51 = vpop.permute.xlu0 %792 }
 0x2fa   :  { %v592_v58 = vpop.f32.mrf.mxu2 }
 0x2fb   :  { %v596_v61 = vadd.f32 %v592_v58, %v530_v59 }
 0x370   :  { %v654_v56 = vpop.f32.mrf.mxu3 }
 0x371   :  { %v660_v62 = vadd.f32 %v654_v56, %v595_v60  ;;  %v843_v60 = vld [vmem:[#allocation20 + $0x8] sm:$0xff] }
 0x373   :  { %v674_v2 = vadd.f32 %v667_v1, %v660_v62 }
 0x375   :  { %v676_v5 = vmax.f32 %v674_v2, 0.0  ;;  %v811_v2 = vld [vmem:[#allocation19] sm:$0xff] }
 0x378   :  { %v657_v63 = vpop.f32.mrf.mxu3 }
 0x379   :  { %v661_v0 = vadd.f32 %v657_v63, %v596_v61 }
 0x37b   :  { %v675_v3 = vadd.f32 %v672_v55, %v661_v0  ;;  %v802_v0 = vpop.permute.xlu0 %801 }
 0x37d   :  { %v677_v4 = vmax.f32 %v675_v3, 0.0  ;;  %v845_v3 = vld [vmem:[#allocation19 + $0x10] sm:$0xff] }
 0x37f   :  { %700 = vmatpush.msrb.mxu0 %v677_v4 }
 0x381   :  { %701 = vmatpush.msrb.mxu0 %v676_v5 }
 0x382   :  { %1524 = vmatmul.msk.f32.vlgmr.msrb.gmra.mxu0 %vm408_vm5, %v678_v6 }
 0x383   :  { %899 = vmatpush.msra.mxu0 %v878_v33 }
 0x385   :  { %900 = vmatpush.msra.mxu0 %v877_v37 }
 0x38a   :  { %1525 = vmatmul.msk.f32.gmra.mxu0 %vm408_vm5, %v679_v7 }
 0x3ff   :  { %v703_v8 = vpop.f32.mrf.mxu0 }
 0x400   :  { %v709_v11 = vsel %vm408_vm5, %v703_v8, 0.0  ;;  %v842_v8 = vld [vmem:[#allocation20] sm:$0xff] }
 0x407   :  { %v706_v9 = vpop.f32.mrf.mxu0 }
 0x408   :  { %v712_v10 = vsel %vm408_vm5, %v706_v9, 0.0  ;;  %v971_v9 = vld [vmem:[#allocation20 + $0x28] sm:$0xff] }
 0x409   :  { %713 = vadd.xlane.f32.xlu1 %v712_v10  ;;  %v970_v10 = vld [vmem:[#allocation20 + $0x20] sm:$0xff] }
 0x411   :  { %710 = vadd.xlane.f32.xlu1 %v709_v11 }
 0x42a   :  { %787 = vperm.xlu1 %1581, %v783_v27  }
 0x47c   :  { %v714_v19 = vpop.xlane.xlu1 %713 }
 0x47d   :  { %v723_v20 = vmul.f32 %v721_v18, %v714_v19  ;;  %v1037_v19 = vld [vmem:[#allocation20 + $0x38] sm:$0xff] }
 0x47f   :  { %v725_v21 = vsub.f32 %v677_v4, %v723_v20  ;;  %v812_v4 = vld [vmem:[#allocation19 + $0x8] sm:$0xff]  ;;  %v1036_v20 = vld [vmem:[#allocation20 + $0x30] sm:$0xff] }
 0x481   :  { %v727_v22 = vmul.f32 %v725_v21, %v725_v21 }
 0x483   :  { %742 = vmatpush.msra.mxu2 %v727_v22 }
 0x484   :  { %v711_v23 = vpop.xlane.xlu1 %710 }
 0x485   :  { %v722_v24 = vmul.f32 %v721_v18, %v711_v23 }
 0x487   :  { %v724_v25 = vsub.f32 %v676_v5, %v722_v24  ;;  %v846_v5 = vld [vmem:[#allocation19 + $0x18] sm:$0xff] }
 0x489   :  { %v726_v26 = vmul.f32 %v724_v25, %v724_v25 }
 0x48b   :  { %743 = vmatpush.msra.mxu2 %v726_v26 }
 0x48c   :  { %1526 = vmatmul.msk.f32.vlgmr.msra.gmra.mxu2 %vm408_vm5, %v678_v6  ;;  %v938_v6 = vld [vmem:[#allocation19 + $0x20] sm:$0xff] }
 0x48d   :  { %928 = vmatpush.msrb.mxu2 %v843_v60 }
 0x48f   :  { %929 = vmatpush.msrb.mxu2 %v842_v8  ;;  %v1431_v8 = vld [vmem:[#allocation25] sm:$0xff] }
 0x491   :  { %1058 = vmatpush.msra.mxu2 %v1037_v19 }
 0x493   :  { %1059 = vmatpush.msra.mxu2 %v1036_v20 }
 0x494   :  { %1527 = vmatmul.msk.f32.gmra.mxu2 %vm408_vm5, %v679_v7  ;;  %v939_v7 = vld [vmem:[#allocation19 + $0x28] sm:$0xff] }
 0x49c   :  { %v788_v56 = vpop.permute.xlu1 %787 }
 0x50f   :  { %v745_v28 = vpop.f32.mrf.mxu2 }
 0x510   :  { %v751_v29 = vsel %vm408_vm5, %v745_v28, 0.0  ;;  %v1079_v28 = vpop.permute.xlu0 %1078 }
 0x511   :  { %752 = vadd.xlane.f32.xlu2 %v751_v29 }
 0x517   :  { %v748_v30 = vpop.f32.mrf.mxu2 }
 0x518   :  { %v754_v31 = vsel %vm408_vm5, %v748_v30, 0.0 }
 0x519   :  { %755 = vadd.xlane.f32.xlu2 %v754_v31 }
 0x531   :  { %806 = vperm.xlu2 %1582, %v798_v32  }
 0x584   :  { %v753_v34 = vpop.xlane.xlu2 %752 }
 0x585   :  { %v757_v35 = vmul.f32 %v753_v34, %v721_v18 }
 0x587   :  { %v759_v36 = vadd.f32 1e-05, %v757_v35 }
 0x589   :  { %1586 = vrsqrt.f32 %v759_v36  ;;  %vm767_vm9 = vweird.f32 %v759_v36 }
 0x58c   :  { %v756_v38 = vpop.xlane.xlu2 %755 }
 0x58d   :  { %v758_v39 = vmul.f32 %v756_v38, %v721_v18  ;;  %v1005_v18 = vld [vmem:[#allocation19 + $0x38] sm:$0xff]  ;;  %v1074_v38 = vpop.permute.xlu0 %1073 }
 0x58f   :  { %v1587_v40 = vpop.eup %1586  ;;  %v760_v41 = vadd.f32 1e-05, %v758_v39 }
 0x590   :  { %v762_v42 = vmul.f32 %v1587_v40, %v759_v36  ;;  %vm768_vm8 = vweird.f32 %v1587_v40 }
 0x591   :  { %1588 = vrsqrt.f32 %v760_v41  ;;  %vm769_vm10 = vmor %vm767_vm9, %vm768_vm8  ;;  %vm777_vm12 = vweird.f32 %v760_v41 }
 0x592   :  { %v763_v43 = vmul.f32 %v1587_v40, %v762_v42 }
 0x594   :  { %v764_v44 = vmul.f32 0.5, %v763_v43  ;;  %v807_v59 = vpop.permute.xlu2 %806  ;;  %v1085_v43 = vld [vmem:[#allocation22] sm:$0xff] }
 0x596   :  { %v765_v45 = vsub.f32 1.5, %v764_v44  ;;  %v1086_v44 = vld [vmem:[#allocation22 + $0x8] sm:$0xff] }
 0x597   :  { %v1589_v46 = vpop.eup %1588 }
 0x598   :  { %v772_v47 = vmul.f32 %v1589_v46, %v760_v41  ;;  %v766_v49 = vmul.f32 %v1587_v40, %v765_v45  ;;  %vm778_vm11 = vweird.f32 %v1589_v46 }
 0x599   :  { %vm779_vm13 = vmor %vm777_vm12, %vm778_vm11 }
 0x59a   :  { %v773_v48 = vmul.f32 %v1589_v46, %v772_v47  ;;  %v770_v53 = vsel %vm769_vm10, %v1587_v40, %v766_v49  ;;  %v1192_v49 = vld [vmem:[%s2333_s15 + $0x8] sm:$0xff] }
 0x59b   :  { %v781_v55 = vmul.f32 %v770_v53, %v724_v25 }
 0x59c   :  { %v774_v50 = vmul.f32 0.5, %v773_v48 }
 0x59d   :  { %v795_v61 = vmul.f32 %v788_v56, %v781_v55 }
 0x59e   :  { %v775_v52 = vsub.f32 1.5, %v774_v50  ;;  %v1205_v50 = vld [vmem:[%s2334_s16] sm:$0xff] }
 0x59f   :  { %v809_v1 = vadd.f32 %v802_v0, %v795_v61 }
 0x5a0   :  { %v776_v54 = vmul.f32 %v1589_v46, %v775_v52 }
 0x5a2   :  { %v780_v57 = vsel %vm779_vm13, %v1589_v46, %v776_v54 }
 0x5a3   :  { %v782_v58 = vmul.f32 %v780_v57, %v725_v21 }
 0x5a5   :  { %v796_v62 = vmul.f32 %v793_v51, %v782_v58  ;;  %v2023_v51 = vmov 64.0  }
 0x5a6   :  { %1590 = vrcp.f32 %v2023_v51  ;;  %v1244_v51 = vld [vmem:[#allocation23 + $0x8] sm:$0xff] }
 0x5a7   :  { %v810_v63 = vadd.f32 %v807_v59, %v796_v62 }
 0x5a9   :  { %833 = vmatpush.msrb.mxu1 %v810_v63  ;;  %867 = vmatpush.msrb.mxu3 %v810_v63 }
 0x5aa   :  { %1026 = vmatpush.msrb.mxu0 %v810_v63 }
 0x5ab   :  { %834 = vmatpush.msrb.mxu1 %v809_v1  ;;  %868 = vmatpush.msrb.mxu3 %v809_v1 }
 0x5ac   :  { %1027 = vmatpush.msrb.mxu0 %v809_v1  ;;  %1528 = vmatmul.msk.f32.vlgmr.msrb.gmra.mxu1 %vm408_vm5, %v811_v2  ;;  %v1591_v52 = vpop.eup %1590 }
 0x5ad   :  { %1530 = vmatmul.msk.f32.vlgmr.msrb.gmra.mxu3 %vm408_vm5, %v845_v3  ;;  %960 = vmatpush.msra.mxu1 %v810_v63  ;;  %v1124_v53 = vmul.f32 64.0, %v1591_v52  ;;  %vm1128_vm15 = vweird.f32 %v1591_v52 }
 0x5ae   :  { %992 = vmatpush.msra.mxu3 %v971_v9 }
 0x5af   :  { %961 = vmatpush.msra.mxu1 %v809_v1  ;;  %v1125_v54 = vsub.f32 1.0, %v1124_v53  ;;  %v1243_v53 = vld [vmem:[#allocation23] sm:$0xff] }
 0x5b0   :  { %993 = vmatpush.msra.mxu3 %v970_v10 }
 0x5b1   :  { %v1126_v55 = vmul.f32 %v1591_v52, %v1125_v54 }
 0x5b3   :  { %v1127_v56 = vadd.f32 %v1591_v52, %v1126_v55 }
 0x5b4   :  { %1529 = vmatmul.msk.f32.gmra.mxu1 %vm408_vm5, %v812_v4 }
 0x5b5   :  { %1531 = vmatmul.msk.f32.gmra.mxu3 %vm408_vm5, %v846_v5  ;;  %v1129_v57 = vsel %vm1128_vm15, %v1591_v52, %v1127_v56  ;;  %v1349_v52 = vld [vmem:[#allocation23 + $0x40] sm:$0xff] }
 0x5bc   :  { %1536 = vmatmul.msk.f32.vlgmr.msra.gmra.mxu1 %vm408_vm5, %v938_v6  ;;  %v1191_v6 = vld [vmem:[%s2333_s15] sm:$0xff] }
 0x5c4   :  { %1537 = vmatmul.msk.f32.gmra.mxu1 %vm408_vm5, %v939_v7  ;;  %v1206_v7 = vld [vmem:[%s2334_s16 + $0x8] sm:$0xff] }
 0x629   :  { %v836_v11 = vpop.f32.mrf.mxu1 }
 0x62a   :  { %1534 = vmatmul.msk.f32.vlgmr.msrb.gmra.mxu2 %vm408_vm5, %v836_v11 }
 0x630   :  { %v870_v12 = vpop.f32.mrf.mxu3 }
 0x631   :  { %1532 = vmatmul.msk.f32.vlgmr.msra.gmra.mxu0 %vm408_vm5, %v870_v12  ;;  %v839_v13 = vpop.f32.mrf.mxu1 }
 0x632   :  { %1535 = vmatmul.msk.f32.gmra.mxu2 %vm408_vm5, %v839_v13 }
 0x638   :  { %v873_v14 = vpop.f32.mrf.mxu3 }
 0x639   :  { %1533 = vmatmul.msk.f32.gmra.mxu0 %vm408_vm5, %v873_v14  ;;  %v963_v15 = vpop.f32.mrf.mxu1 }
 0x63a   :  { %1538 = vmatmul.msk.f32.vlgmr.msra.gmra.mxu3 %vm408_vm5, %v963_v15 }
 0x641   :  { %1540 = vmatmul.msk.f32.vlgmr.msrb.gmra.mxu0 %vm408_vm5, %v1004_v16  ;;  %v966_v17 = vpop.f32.mrf.mxu1 }
 0x642   :  { %1539 = vmatmul.msk.f32.gmra.mxu3 %vm408_vm5, %v966_v17 }
 0x649   :  { %1541 = vmatmul.msk.f32.gmra.mxu0 %vm408_vm5, %v1005_v18 }
 0x6ad   :  { %v931_v25 = vpop.f32.mrf.mxu2 }
 0x6ae   :  { %v902_v21 = vpop.f32.mrf.mxu0 }
 0x6af   :  { %v932_v30 = vadd.f32 %v931_v25, %v902_v21 }
 0x6b5   :  { %v934_v26 = vpop.f32.mrf.mxu2 }
 0x6b6   :  { %v905_v22 = vpop.f32.mrf.mxu0 }
 0x6b7   :  { %v935_v32 = vadd.f32 %v934_v26, %v905_v22 }
 0x6bd   :  { %v995_v27 = vpop.f32.mrf.mxu3 }
 0x6be   :  { %v1029_v23 = vpop.f32.mrf.mxu0  ;;  %v1001_v33 = vadd.f32 %v995_v27, %v932_v30 }
 0x6bf   :  { %1542 = vmatmul.msk.f32.vlgmr.msra.gmra.mxu2 %vm408_vm5, %v1029_v23 }
 0x6c5   :  { %v998_v31 = vpop.f32.mrf.mxu3 }
 0x6c6   :  { %v1032_v24 = vpop.f32.mrf.mxu0  ;;  %v1002_v34 = vadd.f32 %v998_v31, %v935_v32 }
 0x6c7   :  { %1543 = vmatmul.msk.f32.gmra.mxu2 %vm408_vm5, %v1032_v24 }
 0x742   :  { %v1061_v29 = vpop.f32.mrf.mxu2 }
 0x743   :  { %v1067_v35 = vadd.f32 %v1061_v29, %v1001_v33 }
 0x745   :  { %v1081_v39 = vadd.f32 %v1074_v38, %v1067_v35 }
 0x747   :  { %v1083_v42 = vmax.f32 %v1081_v39, 0.0  ;;  %v1549_v39 = vld [vmem:[%s2336_s18 + $0x8] sm:$0xff] }
 0x74a   :  { %v1064_v36 = vpop.f32.mrf.mxu2 }
 0x74b   :  { %v1068_v37 = vadd.f32 %v1064_v36, %v1002_v34 }
 0x74d   :  { %v1082_v40 = vadd.f32 %v1079_v28, %v1068_v37 }
 0x74f   :  { %v1084_v41 = vmax.f32 %v1082_v40, 0.0  ;;  %v1276_v40 = vld [vmem:[#allocation23 + $0x38] sm:$0xff] }
 0x751   :  { %1107 = vmatpush.msrb.mxu1 %v1084_v41 }
 0x753   :  { %1108 = vmatpush.msrb.mxu1 %v1083_v42 }
 0x754   :  { %1544 = vmatmul.msk.f32.vlgmr.msrb.gmra.mxu1 %vm408_vm5, %v1085_v43 }
 0x75c   :  { %1545 = vmatmul.msk.f32.gmra.mxu1 %vm408_vm5, %v1086_v44 }
 0x7d1   :  { %v1110_v45 = vpop.f32.mrf.mxu1 }
 0x7d2   :  { %v1117_v46 = vsel %vm1116_vm14, %v1110_v45, 0.0  ;;  %v1273_v45 = vld [vmem:[#allocation23 + $0x20] sm:$0xff] }
 0x7d3   :  { %1118 = vadd.xlane.f32.xlu1 %v1117_v46  ;;  %v1352_v46 = vld [vmem:[#allocation23 + $0x58] sm:$0xff] }
 0x7d9   :  { %v1113_v47 = vpop.f32.mrf.mxu1 }
 0x7da   :  { %v1120_v48 = vsel %vm1116_vm14, %v1113_v47, 0.0  ;;  %v1246_v47 = vld [vmem:[#allocation23 + $0x18] sm:$0xff] }
 0x7db   :  { %1121 = vadd.xlane.f32.xlu2 %v1120_v48  ;;  %1315 = vmatpush.msra.mxu1 %v1246_v47  ;;  %v1351_v48 = vld [vmem:[#allocation23 + $0x50] sm:$0xff] }
 0x7ec   :  { %1200 = vperm.xlu1 %1581, %v1192_v49   ;;  %v1245_v49 = vld [vmem:[#allocation23 + $0x10] sm:$0xff] }
 0x7ed   :  { %1316 = vmatpush.msra.mxu1 %v1245_v49 }
 0x7ef   :  { %1317 = vmatpush.msra.mxu1 %v1244_v51 }
 0x7f1   :  { %1318 = vmatpush.msra.mxu1 %v1243_v53 }
 0x7f4   :  { %1209 = vperm.xlu1 %1581, %v1205_v50   ;;  %v1350_v50 = vld [vmem:[#allocation23 + $0x48] sm:$0xff] }
 0x846   :  { %v1119_v58 = vpop.xlane.xlu1 %1118 }
 0x847   :  { %v1130_v59 = vmul.f32 %v1129_v57, %v1119_v58  ;;  %v1406_v58 = vld [vmem:[#allocation23 + $0x78] sm:$0xff] }
 0x848   :  { %1422 = vmatpush.msrb.mxu1 %v1406_v58 }
 0x849   :  { %v1132_v62 = vsub.f32 %v1083_v42, %v1130_v59  ;;  %v1219_v42 = vld [vmem:[%s2336_s18] sm:$0xff]  ;;  %v1405_v59 = vld [vmem:[#allocation23 + $0x70] sm:$0xff] }
 0x84a   :  { %1423 = vmatpush.msrb.mxu1 %v1405_v59 }
 0x84b   :  { %v1134_v1 = vmul.f32 %v1132_v62, %v1132_v62 }
 0x84e   :  { %v1122_v60 = vpop.xlane.xlu2 %1121 }
 0x84f   :  { %v1131_v61 = vmul.f32 %v1129_v57, %v1122_v60  ;;  %v1404_v60 = vld [vmem:[#allocation23 + $0x68] sm:$0xff] }
 0x850   :  { %1424 = vmatpush.msrb.mxu1 %v1404_v60 }
 0x851   :  { %v1133_v63 = vsub.f32 %v1084_v41, %v1131_v61  ;;  %v1553_v41 = vld [vmem:[%s2336_s18 + $0x10] sm:$0xff]  ;;  %v1403_v61 = vld [vmem:[#allocation23 + $0x60] sm:$0xff] }
 0x852   :  { %1425 = vmatpush.msrb.mxu1 %v1403_v61 }
 0x853   :  { %v1135_v0 = vmul.f32 %v1133_v63, %v1133_v63 }
 0x855   :  { %1150 = vmatpush.msrb.mxu3 %v1135_v0 }
 0x857   :  { %1151 = vmatpush.msrb.mxu3 %v1134_v1 }
 0x858   :  { %1546 = vmatmul.msk.f32.vlgmr.msrb.gmra.mxu3 %vm408_vm5, %v1085_v43  ;;  %v1275_v43 = vld [vmem:[#allocation23 + $0x30] sm:$0xff] }
 0x85e   :  { %v1201_v25 = vpop.permute.xlu1 %1200 }
 0x860   :  { %1547 = vmatmul.msk.f32.gmra.mxu3 %vm408_vm5, %v1086_v44  ;;  %v1274_v44 = vld [vmem:[#allocation23 + $0x28] sm:$0xff] }
 0x866   :  { %v1210_v37 = vpop.permute.xlu1 %1209 }
 0x8db   :  { %v1153_v2 = vpop.f32.mrf.mxu3 }
 0x8dc   :  { %v1159_v3 = vsel %vm1116_vm14, %v1153_v2, 0.0 }
 0x8dd   :  { %1160 = vadd.xlane.f32.xlu2 %v1159_v3 }
 0x8e3   :  { %v1156_v4 = vpop.f32.mrf.mxu3 }
 0x8e4   :  { %v1162_v5 = vsel %vm1116_vm14, %v1156_v4, 0.0 }
 0x8e5   :  { %1163 = vadd.xlane.f32.xlu0 %v1162_v5 }
 0x8f5   :  { %1195 = vperm.xlu2 %1582, %v1191_v6  }
 0x8f9   :  { %1214 = vperm.xlu0 %1580, %v1206_v7  }
 0x901   :  { %1434 = vperm.xlu0 %1580, %v1431_v8  }
 0x950   :  { %v1161_v9 = vpop.xlane.xlu2 %1160 }
 0x951   :  { %v1165_v10 = vmul.f32 %v1161_v9, %v1129_v57 }
 0x953   :  { %v1167_v11 = vadd.f32 1e-05, %v1165_v10 }
 0x955   :  { %1592 = vrsqrt.f32 %v1167_v11  ;;  %vm1175_vm1 = vweird.f32 %v1167_v11 }
 0x958   :  { %v1164_v12 = vpop.xlane.xlu0 %1163  ;;  %v1196_v32 = vpop.permute.xlu2 %1195 }
 0x959   :  { %v1166_v13 = vmul.f32 %v1164_v12, %v1129_v57  ;;  %v1556_v57 = vld [vmem:[%s2336_s18 + $0x18] sm:$0xff]  ;;  %s2024_s18 = smov [#allocation26]  }
 0x95a   :  { %s1482_s17 = sshll.u32 %s2024_s18, 4  ;;  %s1483_s17 = int_to_ptr.vmem [resolvable:$true] %s1482_s17 }
 0x95b   :  { %v1593_v14 = vpop.eup %1592  ;;  %v1168_v15 = vadd.f32 1e-05, %v1166_v13 }
 0x95c   :  { %v1170_v16 = vmul.f32 %v1593_v14, %v1167_v11  ;;  %vm1176_vm0 = vweird.f32 %v1593_v14 }
 0x95d   :  { %1594 = vrsqrt.f32 %v1168_v15  ;;  %vm1177_vm2 = vmor %vm1175_vm1, %vm1176_vm0  ;;  %vm1185_vm6 = vweird.f32 %v1168_v15 }
 0x95e   :  { %v1171_v17 = vmul.f32 %v1593_v14, %v1170_v16 }
 0x960   :  { %v1172_v18 = vmul.f32 0.5, %v1171_v17 }
 0x962   :  { %v1173_v19 = vsub.f32 1.5, %v1172_v18 }
 0x963   :  { %v1595_v20 = vpop.eup %1594 }
 0x964   :  { %v1180_v21 = vmul.f32 %v1595_v20, %v1168_v15  ;;  %v1174_v22 = vmul.f32 %v1593_v14, %v1173_v19  ;;  %vm1186_vm3 = vweird.f32 %v1595_v20 }
 0x965   :  { %vm1187_vm7 = vmor %vm1185_vm6, %vm1186_vm3 }
 0x966   :  { %v1181_v23 = vmul.f32 %v1595_v20, %v1180_v21  ;;  %v1178_v26 = vsel %vm1177_vm2, %v1593_v14, %v1174_v22 }
 0x967   :  { %v1189_v29 = vmul.f32 %v1178_v26, %v1132_v62 }
 0x968   :  { %v1182_v24 = vmul.f32 0.5, %v1181_v23 }
 0x969   :  { %v1203_v33 = vmul.f32 %v1196_v32, %v1189_v29 }
 0x96a   :  { %v1183_v27 = vsub.f32 1.5, %v1182_v24 }
 0x96b   :  { %v1215_v35 = vpop.permute.xlu0 %1214  ;;  %v1217_v38 = vadd.f32 %v1210_v37, %v1203_v33 }
 0x96c   :  { %v1184_v28 = vmul.f32 %v1595_v20, %v1183_v27 }
 0x96e   :  { %v1188_v30 = vsel %vm1187_vm7, %v1595_v20, %v1184_v28 }
 0x96f   :  { %v1190_v31 = vmul.f32 %v1188_v30, %v1133_v63 }
 0x971   :  { %v1204_v34 = vmul.f32 %v1201_v25, %v1190_v31 }
 0x973   :  { %v1218_v36 = vadd.f32 %v1215_v35, %v1204_v34  ;;  %v1435_v6 = vpop.permute.xlu0 %1434 }
 0x975   :  { %1237 = vmatpush.msra.mxu0 %v1218_v36  ;;  %1266 = vmatpush.msrb.mxu2 %v1218_v36 }
 0x976   :  { %1342 = vmatpush.msra.mxu3 %v1218_v36 }
 0x977   :  { %1238 = vmatpush.msra.mxu0 %v1217_v38  ;;  %1267 = vmatpush.msrb.mxu2 %v1217_v38 }
 0x978   :  { %1343 = vmatpush.msra.mxu3 %v1217_v38  ;;  %1550 = vmatmul.msk.f32.vlgmr.msrb.gmra.mxu2 %vm408_vm5, %v1549_v39 }
 0x979   :  { %1292 = vmatpush.msrb.mxu0 %v1276_v40  ;;  %1554 = vmatmul.msk.f32.vlgmr.msra.gmra.mxu3 %vm408_vm5, %v1553_v41 }
 0x97a   :  { %1548 = vmatmul.msk.f32.vlgmr.msra.gmra.mxu0 %vm408_vm5, %v1219_v42  ;;  %1368 = vmatpush.msra.mxu2 %v1352_v46 }
 0x97b   :  { %1293 = vmatpush.msrb.mxu0 %v1275_v43 }
 0x97c   :  { %1369 = vmatpush.msra.mxu2 %v1351_v48 }
 0x97d   :  { %1294 = vmatpush.msrb.mxu0 %v1274_v44 }
 0x97e   :  { %1370 = vmatpush.msra.mxu2 %v1350_v50 }
 0x97f   :  { %1295 = vmatpush.msrb.mxu0 %v1273_v45 }
 0x980   :  { %1371 = vmatpush.msra.mxu2 %v1349_v52 }
 0x981   :  { %1396 = vmatpush.msra.mxu0 %v1218_v36 }
 0x983   :  { %1397 = vmatpush.msra.mxu0 %v1217_v38 }
 0x9f7   :  { %v1240_v54 = vpop.f32.mrf.mxu0 }
 0x9f8   :  { %1552 = vmatmul.msk.f32.vlgmr.msra.gmra.mxu1 %vm1116_vm14, %v1240_v54 }
 0x9fb   :  { %v1269_v55 = vpop.f32.mrf.mxu2 }
 0x9fc   :  { %1551 = vmatmul.msk.f32.vlgmr.msrb.gmra.mxu0 %vm1116_vm14, %v1269_v55  ;;  %v1345_v56 = vpop.f32.mrf.mxu3 }
 0x9fd   :  { %1555 = vmatmul.msk.f32.vlgmr.msra.gmra.mxu2 %vm1116_vm14, %v1345_v56 }
 0xa04   :  { %1557 = vmatmul.msk.f32.vlgmr.msra.gmra.mxu0 %vm408_vm5, %v1556_v57 }
 0xa75   :  { %v1320_v0 = vpop.f32.mrf.mxu1 }
 0xa79   :  { %v1297_v62 = vpop.f32.mrf.mxu0 }
 0xa7a   :  { %v1321_v2 = vadd.f32 %v1320_v0, %v1297_v62 }
 0xa80   :  { %v1373_v1 = vpop.f32.mrf.mxu2 }
 0xa81   :  { %v1399_v63 = vpop.f32.mrf.mxu0  ;;  %v1376_v3 = vadd.f32 %v1373_v1, %v1321_v2 }
 0xa82   :  { %1558 = vmatmul.msk.f32.vlgmr.msrb.gmra.mxu1 %vm1116_vm14, %v1399_v63 }
 0xaff   :  { %v1427_v4 = vpop.f32.mrf.mxu1 }
 0xb00   :  { %v1430_v5 = vadd.f32 %v1427_v4, %v1376_v3 }
 0xb02   :  { %v1437_v7 = vadd.f32 %v1435_v6, %v1430_v5 }
 0xb04   :  { %v1438_v8 = vsub.f32 0.0, %v1437_v7 }
 0xb06   :  { %v1439_v9 = vmul.f32 1.442695, %v1438_v8 }
 0xb08   :  { %1596 = vpow2.f32 %v1439_v9 }
 0xb0e   :  { %v1597_v10 = vpop.eup %1596 }
 0xb0f   :  { %v1441_v11 = vadd.f32 1.0, %v1597_v10 }
 0xb11   :  { %1598 = vrcp.f32 %v1441_v11  ;;  %v1453_v15 = vand.u32 2147483648, %v1441_v11  ;;  %v1451_v17 = vand.u32 2147483647, %v1441_v11  ;;  %vm1447_vm8 = vweird.f32 %v1441_v11 }
 0xb13   :  { %v1454_v19 = vor.u32 1.1754944e-38, %v1453_v15  ;;  %vm1452_vm10 = vcmp.eq.f32.partialorder %v1451_v17, 8.507059e+37 }
 0xb17   :  { %v1599_v12 = vpop.eup %1598 }
 0xb18   :  { %v1443_v13 = vmul.f32 %v1599_v12, %v1441_v11  ;;  %vm1448_vm5 = vweird.f32 %v1599_v12 }
 0xb19   :  { %vm1449_vm9 = vmor %vm1447_vm8, %vm1448_vm5 }
 0xb1a   :  { %v1444_v14 = vsub.f32 1.0, %v1443_v13 }
 0xb1c   :  { %v1445_v16 = vmul.f32 %v1599_v12, %v1444_v14 }
 0xb1e   :  { %v1446_v18 = vadd.f32 %v1599_v12, %v1445_v16 }
 0xb20   :  { %v1450_v20 = vsel %vm1449_vm9, %v1599_v12, %v1446_v18 }
 0xb21   :  { %v1455_v21 = vsel %vm1452_vm10, %v1454_v19, %v1450_v20 }
 0xb22   :  { %v1457_v22 = vsel %vm376_vm4, %v1455_v21, 0.0 }
 0xb23   :  { %1458 = vadd.xlane.f32.xlu2 %v1457_v22 }
 0xb96   :  { %v1459_v23 = vpop.xlane.xlu2 %1458 }
 0xb97   :  { %v1460_v24 = vmul.f32 0.1, %v1459_v23 }
 0xb99   :  { %1600 = vrcp.f32 %v1460_v24  ;;  %v1472_v28 = vand.u32 2147483648, %v1460_v24  ;;  %v1470_v30 = vand.u32 2147483647, %v1460_v24  ;;  %vm1466_vm12 = vweird.f32 %v1460_v24 }
 0xb9b   :  { %v1473_v32 = vor.u32 1.1754944e-38, %v1472_v28  ;;  %vm1471_vm14 = vcmp.eq.f32.partialorder %v1470_v30, 8.507059e+37 }
 0xb9f   :  { %v1601_v25 = vpop.eup %1600 }
 0xba0   :  { %v1462_v26 = vmul.f32 %v1601_v25, %v1460_v24  ;;  %vm1467_vm11 = vweird.f32 %v1601_v25 }
 0xba1   :  { %vm1468_vm13 = vmor %vm1466_vm12, %vm1467_vm11 }
 0xba2   :  { %v1463_v27 = vsub.f32 1.0, %v1462_v26 }
 0xba4   :  { %v1464_v29 = vmul.f32 %v1601_v25, %v1463_v27 }
 0xba6   :  { %v1465_v31 = vadd.f32 %v1601_v25, %v1464_v29 }
 0xba8   :  { %v1469_v33 = vsel %vm1468_vm13, %v1601_v25, %v1465_v31 }
 0xba9   :  { %v1474_v34 = vsel %vm1471_vm14, %v1473_v32, %v1469_v33 }
 0xbaa   :  { %v1475_v35 = vmul.f32 %v1474_v34, %v1455_v21 }
 0xbac   :  { %1476 = vst.msk [vmem:[#allocation26] sm:$0xff] %vm376_vm4, %v1475_v35 }
 0xbad   :  { %1487 = dma.vmem_to_hbm [thread:$0]  %s1483_s17, 128, %s1485_s1, [#allocation4]  }
 0xbae   :  { %2002 = dma.done.wait [#allocation4], 128  }
 0xbaf   :  { %2003 = vsyncadd [#allocation4], 4294967168 }
 0xbb0   :  { %1492 = vsyncpa [#allocation3], 1 }
 0xbb1   :  { %1493 = vsyncpa [#allocation6], 1 }
 0xbb2   :  { %1494 = vsyncpa [#allocation9], 1 }
 0xbb3   :  { %1495 = vsyncpa [#allocation12], 1 }
 0xbb4   :  { %1496 = vsyncpa [#allocation15], 1 }
 0xbb5   :  { %1497 = vsyncpa [#allocation18], 1 }
 0xbb6   :  { %1498 = vsyncpa [#allocation21], 1 }
 0xbb7   :  { %1499 = vsyncpa [#allocation24], 1 }
 0xbb8   :  { %1500 = vsyncpa [#allocation4], 1 }

</bundles_post_ra>
